<compile_context>
chip_gen: v7x
topology: tpu7x:2x2x1
jax: 0.10.0
libtpu: 0.0.40
codegen_flags: <defaults>
</compile_context>

<pallas_src>
import functools

import jax
import jax.numpy as jnp
import numpy as np
from jax.experimental import pallas as pl
from jax.experimental.pallas import tpu as pltpu


def folding_kernel(
    feat1_ref, feat4_ref,             # per-block (1, H, B) feature columns
    hseed_ref, ind_ref,               # resident (H, B*Np) seed term, (B, B*Np) indicator
    w2_ref, b2_ref,                   # folding1 conv2 (BN folded)
    w43_ref,                          # fused folding1.conv3 @ folding2.conv1[:, :3]
    w5_ref, b5_ref,                   # folding2 conv2 (BN folded)
    w6_ref, b6_ref,                   # folding2 conv3
    out_ref,
):
  """One block of B samples per grid step, lane-stacked as (C, B*Np)."""
  f32 = jnp.float32
  ind = ind_ref[...]                                   # (B, B*Np) one-hot per sample span

  # folding1 layer1: relu(W1'[:,:2]@seed + b1' + W1'[:,2:]@x); seed part is resident,
  # per-sample columns are lane-broadcast via the indicator matmul (MXU, not VPU copies).
  h1 = jnp.maximum(
      hseed_ref[...] + jnp.dot(feat1_ref[0], ind, preferred_element_type=f32), 0.0)
  # folding1 layer2
  h2 = jnp.maximum(
      jnp.dot(w2_ref[...], h1, preferred_element_type=f32) + b2_ref[...], 0.0)
  # folding1 layer3 fused with folding2 layer1 (exact: no nonlinearity between them);
  # feat4 columns already contain b4' + W4'[:, :3] @ b3.
  g1 = jnp.maximum(
      jnp.dot(w43_ref[...], h2, preferred_element_type=f32)
      + jnp.dot(feat4_ref[0], ind, preferred_element_type=f32), 0.0)
  # folding2 layer2
  g2 = jnp.maximum(
      jnp.dot(w5_ref[...], g1, preferred_element_type=f32) + b5_ref[...], 0.0)
  # folding2 layer3
  fd2 = jnp.dot(w6_ref[...], g2, preferred_element_type=f32) + b6_ref[...]

  # Single lane-dense store per grid step; un-stacking happens in the wrapper.
  out_ref[0] = fd2


def make_folding_seed(step):
  """Same construction as the PyTorch module (row-major flattening)."""
  lin = jnp.linspace(-1.0, 1.0, step, dtype=jnp.float32)
  a = jnp.broadcast_to(lin[None, :], (step, step)).reshape(1, -1)
  b = jnp.broadcast_to(lin[:, None], (step, step)).reshape(1, -1)
  return jnp.concatenate([a, b], axis=0)  # (2, step*step)


def init_params(key, in_channel, hidden_dim):
  """Deterministic synthetic parameters matching the nn.Module layer shapes."""
  H, H2, C = hidden_dim, hidden_dim // 2, in_channel
  ks = jax.random.split(key, 32)
  ki = iter(range(32))

  def w(shape, scale=0.1):
    return scale * jax.random.normal(ks[next(ki)], shape, dtype=jnp.float32)

  def bn(n):
    gamma = jax.random.uniform(ks[next(ki)], (n,), jnp.float32, 0.5, 1.5)
    beta = 0.1 * jax.random.normal(ks[next(ki)], (n,), dtype=jnp.float32)
    mean = 0.1 * jax.random.normal(ks[next(ki)], (n,), dtype=jnp.float32)
    var = jax.random.uniform(ks[next(ki)], (n,), jnp.float32, 0.5, 1.5)
    eps = 1e-5  # PyTorch BatchNorm1d default
    scale = gamma / jnp.sqrt(var + eps)
    shift = beta - mean * scale
    return scale, shift

  p = {}
  # folding1
  p["w1"], p["b1"] = w((H, C + 2)), w((H,))
  p["s1"], p["t1"] = bn(H)
  p["w2"], p["b2"] = w((H2, H)), w((H2,))
  p["s2"], p["t2"] = bn(H2)
  p["w3"], p["b3"] = w((3, H2)), w((3,))
  # folding2
  p["w4"], p["b4"] = w((H, C + 3)), w((H,))
  p["s4"], p["t4"] = bn(H)
  p["w5"], p["b5"] = w((H2, H)), w((H2,))
  p["s5"], p["t5"] = bn(H2)
  p["w6"], p["b6"] = w((3, H2)), w((3,))
  return p


def _fold_bn(w, b, s, t):
  """Fold eval-mode BN (scale s, shift t) into the preceding conv: W'=s*W, b'=s*b+t."""
  return s[:, None] * w, s * b + t


@functools.partial(jax.jit, static_argnames=("step", "block_bs"))
def folding_forward(x, params, *, step, block_bs=8):
  """x: (bs, in_channel) float32 -> fd2: (bs, 3, step*step) float32."""
  bs, C = x.shape
  N = step * step
  Np = ((N + 127) // 128) * 128        # keep every per-sample lane span 128-aligned
  p = params
  H = p["w1"].shape[0]
  H2 = p["w2"].shape[0]
  f32 = jnp.float32
  x = x.astype(f32)

  # --- fold BatchNorm (eval mode) into the conv weights ---
  w1f, b1f = _fold_bn(p["w1"], p["b1"], p["s1"], p["t1"])   # (H, C+2), (H,)
  w2f, b2f = _fold_bn(p["w2"], p["b2"], p["s2"], p["t2"])   # (H2, H), (H2,)
  w4f, b4f = _fold_bn(p["w4"], p["b4"], p["s4"], p["t4"])   # (H, C+3), (H,)
  w5f, b5f = _fold_bn(p["w5"], p["b5"], p["s5"], p["t5"])   # (H2, H), (H2,)

  # --- fuse folding1.conv3 into folding2.conv1 (exact, no ReLU between) ---
  w43 = jnp.dot(w4f[:, :3], p["w3"])                        # (H, H2)
  b43 = jnp.dot(w4f[:, :3], p["b3"]) + b4f                  # (H,) — added exactly once

  # --- hoist sample-independent seed term and per-sample feature projections ---
  seed = make_folding_seed(step)                            # (2, N)
  hseed = jnp.dot(w1f[:, :2], seed) + b1f[:, None]          # (H, N), includes b1'
  hseed = jnp.pad(hseed, ((0, 0), (0, Np - N)))             # (H, Np)
  xT = x.T                                                  # (C, bs)
  feat1 = jnp.dot(w1f[:, 2:], xT)                           # (H, bs)
  feat4 = jnp.dot(w4f[:, 3:], xT) + b43[:, None]            # (H, bs)

  # --- batch blocking: B samples per step, grid >= 2 for v7x's two TensorCores ---
  B = max(1, min(block_bs, -(-bs // 2)))
  nb = -(-bs // B)
  bs_p = nb * B
  pad = bs_p - bs
  feat1 = jnp.pad(feat1, ((0, 0), (0, pad))).reshape(H, nb, B).transpose(1, 0, 2)  # (nb,H,B)
  feat4 = jnp.pad(feat4, ((0, 0), (0, pad))).reshape(H, nb, B).transpose(1, 0, 2)  # (nb,H,B)

  # --- resident lane-stacked operands ---
  hseed_w = jnp.tile(hseed, (1, B))                         # (H, B*Np)
  lane_owner = jnp.arange(B * Np, dtype=jnp.int32) // Np
  ind = (jnp.arange(B, dtype=jnp.int32)[:, None] == lane_owner[None, :]).astype(f32)

  def col(v):
    return v.reshape(-1, 1)

  operands = (
      feat1, feat4, hseed_w, ind,
      w2f, col(b2f), w43, w5f, col(b5f), p["w6"], col(p["b6"]),
  )

  def resident_spec(arr):
    nd = arr.ndim
    return pl.BlockSpec(arr.shape, lambda i, _nd=nd: (0,) * _nd)

  in_specs = [
      pl.BlockSpec((1, H, B), lambda i: (i, 0, 0)),   # feat1: one batch block per step
      pl.BlockSpec((1, H, B), lambda i: (i, 0, 0)),   # feat4
  ] + [resident_spec(a) for a in operands[2:]]        # parameters: resident

  out_spec = pl.BlockSpec((1, 3, B * Np), lambda i: (i, 0, 0))

  # Advisory cost estimate so XLA schedules the custom call sensibly.
  flops = nb * 2 * B * Np * (2 * H * B + 3 * H * H2 + 3 * H2)
  bytes_accessed = 4 * (sum(int(np.prod(a.shape)) for a in operands) + nb * 3 * B * Np)

  out = pl.pallas_call(
      folding_kernel,
      out_shape=jax.ShapeDtypeStruct((nb, 3, B * Np), f32),
      grid_spec=pltpu.PrefetchScalarGridSpec(
          num_scalar_prefetch=0,
          grid=(nb,),
          in_specs=in_specs,
          out_specs=out_spec,
      ),
      compiler_params=pltpu.CompilerParams(
          dimension_semantics=("parallel",),
      ),
      cost_estimate=pl.CostEstimate(
          flops=flops, transcendentals=0, bytes_accessed=bytes_accessed),
  )(*operands)

  # Un-stack the lane axis back into per-sample outputs; drop batch/lane padding.
  out = out.reshape(nb, 3, B, Np).transpose(0, 2, 1, 3).reshape(bs_p, 3, Np)
  return out[:bs, :, :N]


def folding_reference(x, params, *, step):
  """Plain-JAX reference mirroring the PyTorch forward (eval-mode BN)."""
  bs, C = x.shape
  N = step * step
  p = params
  seed = jnp.broadcast_to(make_folding_seed(step)[None], (bs, 2, N))
  feat = jnp.broadcast_to(x[:, :, None], (bs, C, N))

  def conv(w, b, h):
    return jnp.einsum("oi,bin->bon", w, h) + b[None, :, None]

  def bn_relu(s, t, h):
    return jnp.maximum(h * s[None, :, None] + t[None, :, None], 0.0)

  h = jnp.concatenate([seed, feat], axis=1)
  h = bn_relu(p["s1"], p["t1"], conv(p["w1"], p["b1"], h))
  h = bn_relu(p["s2"], p["t2"], conv(p["w2"], p["b2"], h))
  fd1 = conv(p["w3"], p["b3"], h)

  h = jnp.concatenate([fd1, feat], axis=1)
  h = bn_relu(p["s4"], p["t4"], conv(p["w4"], p["b4"], h))
  h = bn_relu(p["s5"], p["t5"], conv(p["w5"], p["b5"], h))
  fd2 = conv(p["w6"], p["b6"], h)
  return fd2


if __name__ == "__main__":
  bs, in_channel, step, hidden_dim = 8, 8, 16, 64   # N = 256 points per sample
  key = jax.random.PRNGKey(0)
  k_x, k_p = jax.random.split(key)

  x = jax.random.normal(k_x, (bs, in_channel), dtype=jnp.float32)
  params = init_params(k_p, in_channel, hidden_dim)

  # block_bs=4 with bs=8 -> grid of 2 parallel steps (both v7x TensorCores busy);
  # each step runs one lane-stacked (C, 4*256) matmul chain.
  out = folding_forward(x, params, step=step, block_bs=4)
  out = jax.block_until_ready(out)

  ref = folding_reference(x, params, step=step)
  assert out.shape == (bs, 3, step * step), out.shape
  np.testing.assert_allclose(np.asarray(out), np.asarray(ref), rtol=1e-3, atol=1e-3)

  print("KERNEL_OK")
</pallas_src>

<mosaic_0001>
module attributes {stable_mosaic.version = 11 : i64} {
  func.func @folding_kernel(%arg0: i32, %arg1: memref<1x64x4xf32, #tpu.memory_space<vmem>>, %arg2: memref<1x64x4xf32, #tpu.memory_space<vmem>>, %arg3: memref<64x1024xf32, #tpu.memory_space<vmem>>, %arg4: memref<4x1024xf32, #tpu.memory_space<vmem>>, %arg5: memref<32x64xf32, #tpu.memory_space<vmem>>, %arg6: memref<32x1xf32, #tpu.memory_space<vmem>>, %arg7: memref<64x32xf32, #tpu.memory_space<vmem>>, %arg8: memref<32x64xf32, #tpu.memory_space<vmem>>, %arg9: memref<32x1xf32, #tpu.memory_space<vmem>>, %arg10: memref<3x32xf32, #tpu.memory_space<vmem>>, %arg11: memref<3x1xf32, #tpu.memory_space<vmem>>, %arg12: memref<1x3x1024xf32, #tpu.memory_space<vmem>>) attributes {dimension_semantics = [#tpu.dimension_semantics<parallel>], iteration_bounds = array<i64: 2>, scalar_prefetch = 0 : i64, scratch_operands = 0 : i64, tpu.core_type = #tpu.core_type<tc>, window_params = [{transform_indices = @transform_0, window_bounds = array<i64: 1, 64, 4>}, {transform_indices = @transform_1, window_bounds = array<i64: 1, 64, 4>}, {pipeline_mode = #tpu.pipeline_mode<synchronous>, transform_indices = @transform_2, window_bounds = array<i64: 64, 1024>}, {pipeline_mode = #tpu.pipeline_mode<synchronous>, transform_indices = @transform_3, window_bounds = array<i64: 4, 1024>}, {pipeline_mode = #tpu.pipeline_mode<synchronous>, transform_indices = @transform_4, window_bounds = array<i64: 32, 64>}, {pipeline_mode = #tpu.pipeline_mode<synchronous>, transform_indices = @transform_5, window_bounds = array<i64: 32, 1>}, {pipeline_mode = #tpu.pipeline_mode<synchronous>, transform_indices = @transform_6, window_bounds = array<i64: 64, 32>}, {pipeline_mode = #tpu.pipeline_mode<synchronous>, transform_indices = @transform_7, window_bounds = array<i64: 32, 64>}, {pipeline_mode = #tpu.pipeline_mode<synchronous>, transform_indices = @transform_8, window_bounds = array<i64: 32, 1>}, {pipeline_mode = #tpu.pipeline_mode<synchronous>, transform_indices = @transform_9, window_bounds = array<i64: 3, 32>}, {pipeline_mode = #tpu.pipeline_mode<synchronous>, transform_indices = @transform_10, window_bounds = array<i64: 3, 1>}, {transform_indices = @transform_11, window_bounds = array<i64: 1, 3, 1024>}]} {
    %c0 = arith.constant 0 : index
    %c0_0 = arith.constant 0 : index
    %0 = vector.load %arg4[%c0, %c0_0] : memref<4x1024xf32, #tpu.memory_space<vmem>>, vector<4x1024xf32>
    %c0_1 = arith.constant 0 : index
    %c0_2 = arith.constant 0 : index
    %1 = vector.load %arg3[%c0_1, %c0_2] : memref<64x1024xf32, #tpu.memory_space<vmem>>, vector<64x1024xf32>
    %c0_3 = arith.constant 0 : index
    %c0_4 = arith.constant 0 : index
    %c0_5 = arith.constant 0 : index
    %2 = vector.load %arg1[%c0_3, %c0_4, %c0_5] : memref<1x64x4xf32, #tpu.memory_space<vmem>>, vector<1x64x4xf32>
    %3 = vector.shape_cast %2 : vector<1x64x4xf32> to vector<64x4xf32>
    %cst = arith.constant dense<0.000000e+00> : vector<64x1024xf32>
    %4 = tpu.matmul %3, %0, %cst {dimension_numbers = #tpu.dot_dimension_numbers<[1], [0], [0], [1], [0, 0, 1, 1], [], []>} : vector<64x4xf32>, vector<4x1024xf32>, vector<64x1024xf32> -> vector<64x1024xf32>
    %5 = arith.addf %1, %4 : vector<64x1024xf32>
    %cst_6 = arith.constant 0.000000e+00 : f32
    %6 = vector.broadcast %cst_6 : f32 to vector<64x1024xf32>
    %7 = arith.maximumf %5, %6 : vector<64x1024xf32>
    %c0_7 = arith.constant 0 : index
    %c0_8 = arith.constant 0 : index
    %8 = vector.load %arg5[%c0_7, %c0_8] : memref<32x64xf32, #tpu.memory_space<vmem>>, vector<32x64xf32>
    %cst_9 = arith.constant dense<0.000000e+00> : vector<32x1024xf32>
    %9 = tpu.matmul %8, %7, %cst_9 {dimension_numbers = #tpu.dot_dimension_numbers<[1], [0], [0], [1], [0, 0, 1, 1], [], []>} : vector<32x64xf32>, vector<64x1024xf32>, vector<32x1024xf32> -> vector<32x1024xf32>
    %c0_10 = arith.constant 0 : index
    %c0_11 = arith.constant 0 : index
    %10 = vector.load %arg6[%c0_10, %c0_11] : memref<32x1xf32, #tpu.memory_space<vmem>>, vector<32x1xf32>
    %11 = vector.broadcast %10 : vector<32x1xf32> to vector<32x1024xf32>
    %12 = arith.addf %9, %11 : vector<32x1024xf32>
    %cst_12 = arith.constant 0.000000e+00 : f32
    %13 = vector.broadcast %cst_12 : f32 to vector<32x1024xf32>
    %14 = arith.maximumf %12, %13 : vector<32x1024xf32>
    %c0_13 = arith.constant 0 : index
    %c0_14 = arith.constant 0 : index
    %15 = vector.load %arg7[%c0_13, %c0_14] : memref<64x32xf32, #tpu.memory_space<vmem>>, vector<64x32xf32>
    %cst_15 = arith.constant dense<0.000000e+00> : vector<64x1024xf32>
    %16 = tpu.matmul %15, %14, %cst_15 {dimension_numbers = #tpu.dot_dimension_numbers<[1], [0], [0], [1], [0, 0, 1, 1], [], []>} : vector<64x32xf32>, vector<32x1024xf32>, vector<64x1024xf32> -> vector<64x1024xf32>
    %c0_16 = arith.constant 0 : index
    %c0_17 = arith.constant 0 : index
    %c0_18 = arith.constant 0 : index
    %17 = vector.load %arg2[%c0_16, %c0_17, %c0_18] : memref<1x64x4xf32, #tpu.memory_space<vmem>>, vector<1x64x4xf32>
    %18 = vector.shape_cast %17 : vector<1x64x4xf32> to vector<64x4xf32>
    %cst_19 = arith.constant dense<0.000000e+00> : vector<64x1024xf32>
    %19 = tpu.matmul %18, %0, %cst_19 {dimension_numbers = #tpu.dot_dimension_numbers<[1], [0], [0], [1], [0, 0, 1, 1], [], []>} : vector<64x4xf32>, vector<4x1024xf32>, vector<64x1024xf32> -> vector<64x1024xf32>
    %20 = arith.addf %16, %19 : vector<64x1024xf32>
    %cst_20 = arith.constant 0.000000e+00 : f32
    %21 = vector.broadcast %cst_20 : f32 to vector<64x1024xf32>
    %22 = arith.maximumf %20, %21 : vector<64x1024xf32>
    %c0_21 = arith.constant 0 : index
    %c0_22 = arith.constant 0 : index
    %23 = vector.load %arg8[%c0_21, %c0_22] : memref<32x64xf32, #tpu.memory_space<vmem>>, vector<32x64xf32>
    %cst_23 = arith.constant dense<0.000000e+00> : vector<32x1024xf32>
    %24 = tpu.matmul %23, %22, %cst_23 {dimension_numbers = #tpu.dot_dimension_numbers<[1], [0], [0], [1], [0, 0, 1, 1], [], []>} : vector<32x64xf32>, vector<64x1024xf32>, vector<32x1024xf32> -> vector<32x1024xf32>
    %c0_24 = arith.constant 0 : index
    %c0_25 = arith.constant 0 : index
    %25 = vector.load %arg9[%c0_24, %c0_25] : memref<32x1xf32, #tpu.memory_space<vmem>>, vector<32x1xf32>
    %26 = vector.broadcast %25 : vector<32x1xf32> to vector<32x1024xf32>
    %27 = arith.addf %24, %26 : vector<32x1024xf32>
    %cst_26 = arith.constant 0.000000e+00 : f32
    %28 = vector.broadcast %cst_26 : f32 to vector<32x1024xf32>
    %29 = arith.maximumf %27, %28 : vector<32x1024xf32>
    %c0_27 = arith.constant 0 : index
    %c0_28 = arith.constant 0 : index
    %30 = vector.load %arg10[%c0_27, %c0_28] : memref<3x32xf32, #tpu.memory_space<vmem>>, vector<3x32xf32>
    %cst_29 = arith.constant dense<0.000000e+00> : vector<3x1024xf32>
    %31 = tpu.matmul %30, %29, %cst_29 {dimension_numbers = #tpu.dot_dimension_numbers<[1], [0], [0], [1], [0, 0, 1, 1], [], []>} : vector<3x32xf32>, vector<32x1024xf32>, vector<3x1024xf32> -> vector<3x1024xf32>
    %c0_30 = arith.constant 0 : index
    %c0_31 = arith.constant 0 : index
    %32 = vector.load %arg11[%c0_30, %c0_31] : memref<3x1xf32, #tpu.memory_space<vmem>>, vector<3x1xf32>
    %33 = vector.broadcast %32 : vector<3x1xf32> to vector<3x1024xf32>
    %34 = arith.addf %31, %33 : vector<3x1024xf32>
    %c0_32 = arith.constant 0 : index
    %c0_33 = arith.constant 0 : index
    %c0_34 = arith.constant 0 : index
    %35 = vector.load %arg12[%c0_32, %c0_33, %c0_34] : memref<1x3x1024xf32, #tpu.memory_space<vmem>>, vector<1x3x1024xf32>
    %36 = vector.shape_cast %35 : vector<1x3x1024xf32> to vector<3x1024xf32>
    %37 = vector.shape_cast %34 : vector<3x1024xf32> to vector<1x3x1024xf32>
    tpu.vector_store %arg12[%c0_32, %c0_33, %c0_34], %37 {strides = array<i32>} : memref<1x3x1024xf32, #tpu.memory_space<vmem>>, vector<1x3x1024xf32>,
    return
  }
  func.func @transform_0(%arg0: i32) -> (i32, i32, i32) {
    %c0_i32 = arith.constant 0 : i32
    %c0_i32_0 = arith.constant 0 : i32
    %c0_i32_1 = arith.constant 0 : i32
    return %arg0, %c0_i32, %c0_i32_0 : i32, i32, i32
  }
  func.func @transform_1(%arg0: i32) -> (i32, i32, i32) {
    %c0_i32 = arith.constant 0 : i32
    %c0_i32_0 = arith.constant 0 : i32
    %c0_i32_1 = arith.constant 0 : i32
    return %arg0, %c0_i32, %c0_i32_0 : i32, i32, i32
  }
  func.func @transform_2(%arg0: i32) -> (i32, i32) {
    %c0_i32 = arith.constant 0 : i32
    %c0_i32_0 = arith.constant 0 : i32
    %c0_i32_1 = arith.constant 0 : i32
    return %c0_i32, %c0_i32_0 : i32, i32
  }
  func.func @transform_3(%arg0: i32) -> (i32, i32) {
    %c0_i32 = arith.constant 0 : i32
    %c0_i32_0 = arith.constant 0 : i32
    %c0_i32_1 = arith.constant 0 : i32
    return %c0_i32, %c0_i32_0 : i32, i32
  }
  func.func @transform_4(%arg0: i32) -> (i32, i32) {
    %c0_i32 = arith.constant 0 : i32
    %c0_i32_0 = arith.constant 0 : i32
    %c0_i32_1 = arith.constant 0 : i32
    return %c0_i32, %c0_i32_0 : i32, i32
  }
  func.func @transform_5(%arg0: i32) -> (i32, i32) {
    %c0_i32 = arith.constant 0 : i32
    %c0_i32_0 = arith.constant 0 : i32
    %c0_i32_1 = arith.constant 0 : i32
    return %c0_i32, %c0_i32_0 : i32, i32
  }
  func.func @transform_6(%arg0: i32) -> (i32, i32) {
    %c0_i32 = arith.constant 0 : i32
    %c0_i32_0 = arith.constant 0 : i32
    %c0_i32_1 = arith.constant 0 : i32
    return %c0_i32, %c0_i32_0 : i32, i32
  }
  func.func @transform_7(%arg0: i32) -> (i32, i32) {
    %c0_i32 = arith.constant 0 : i32
    %c0_i32_0 = arith.constant 0 : i32
    %c0_i32_1 = arith.constant 0 : i32
    return %c0_i32, %c0_i32_0 : i32, i32
  }
  func.func @transform_8(%arg0: i32) -> (i32, i32) {
    %c0_i32 = arith.constant 0 : i32
    %c0_i32_0 = arith.constant 0 : i32
    %c0_i32_1 = arith.constant 0 : i32
    return %c0_i32, %c0_i32_0 : i32, i32
  }
  func.func @transform_9(%arg0: i32) -> (i32, i32) {
    %c0_i32 = arith.constant 0 : i32
    %c0_i32_0 = arith.constant 0 : i32
    %c0_i32_1 = arith.constant 0 : i32
    return %c0_i32, %c0_i32_0 : i32, i32
  }
  func.func @transform_10(%arg0: i32) -> (i32, i32) {
    %c0_i32 = arith.constant 0 : i32
    %c0_i32_0 = arith.constant 0 : i32
    %c0_i32_1 = arith.constant 0 : i32
    return %c0_i32, %c0_i32_0 : i32, i32
  }
  func.func @transform_11(%arg0: i32) -> (i32, i32, i32) {
    %c0_i32 = arith.constant 0 : i32
    %c0_i32_0 = arith.constant 0 : i32
    %c0_i32_1 = arith.constant 0 : i32
    return %arg0, %c0_i32, %c0_i32_0 : i32, i32, i32
  }
}

</mosaic_0001>

<bundles_post_ra>
// kernel: folding_forward.1
= control target key start
LH: loop header
LB: loop body
LE: loop exit
PB: predicated region body
PF: predicated region fallthrough
CT: control target
= control target key end

     0   :  { %s3890_s17 = smov 0   ;;  %s4710_s0 = inlined_call_operand.vmem [shape: f32[2,64,4], index: 0, kind: input, shape index: {}]   ;;  %s4711_s1 = inlined_call_operand.vmem [shape: f32[2,64,4], index: 1, kind: input, shape index: {}]   ;;  %s4712_s2 = inlined_call_operand.vmem [shape: f32[64,1024], index: 2, kind: input, shape index: {}]   ;;  %s4713_s3 = inlined_call_operand.vmem [shape: f32[4,1024], index: 3, kind: input, shape index: {}]   ;;  %s4714_s4 = inlined_call_operand.vmem [shape: f32[32,64], index: 4, kind: input, shape index: {}]   ;;  %s4715_s5 = inlined_call_operand.vmem [shape: f32[32,1], index: 5, kind: input, shape index: {}]   ;;  %s4716_s6 = inlined_call_operand.vmem [shape: f32[64,32], index: 6, kind: input, shape index: {}]   ;;  %s4717_s7 = inlined_call_operand.vmem [shape: f32[32,64], index: 7, kind: input, shape index: {}]   ;;  %s4718_s8 = inlined_call_operand.vmem [shape: f32[32,1], index: 8, kind: input, shape index: {}]   ;;  %s4719_s9 = inlined_call_operand.vmem [shape: f32[3,32], index: 9, kind: input, shape index: {}]   ;;  %s4720_s10 = inlined_call_operand.vmem [shape: f32[3,1], index: 10, kind: input, shape index: {}]   ;;  %s4721_s11 = inlined_call_operand.vmem [shape: f32[2,3,1024], index: 11, kind: output, shape index: {}]  }
   0x1 LB: > { %s3384_s18 = sadd.s32 4294967295, %s3826_s17   ;;  %p3388_p0 = scmp.ge.s32.totalorder %s3826_s17, 1  ;;  %s3826_s17 = sphi %s3890_s17, %s21_s17  }
   0x2   : > { %p347_p1 = scmp.lt.s32.totalorder %s3826_s17, 3 }
   0x4   : > { %p348_p2 = pnand %p3388_p0, %p347_p1 }
   0x5   : > { %v3901_v0 = vld [vmem:[%s4713_s3] sm:$0xff] (!%p348_p2)  ;;  %vm516_vm0 = vcmask (!%p348_p2), 1043456   ;;  %v3906_v1 = vld [vmem:[%s4713_s3 + $0x8] sm:$0xff] (!%p348_p2)  ;;  %p392_p3 = scmp.lt.s32.totalorder (!%p348_p2), %s3384_s18, 1  ;;  %v3828_v4 = vmov (!%p348_p2), 0.0   ;;  %v3921_v5 = vld [vmem:[%s4713_s3 + $0x10] sm:$0xff] (!%p348_p2) }
   0x6   : > { %351 = sbr.rel (%p348_p2) target bundleno = 1238 (0x4d6), region = 64  ;;  %v3910_v2 = vcombine.high (!%p348_p2), %v3901_v0, %v3901_v0  ;;  %v3914_v3 = vcombine.high (!%p348_p2), %v3906_v1, %v3906_v1  ;;  %597 = vmatprep.mubr.f32.mxu0 (!%p348_p2), %v3828_v4  ;;  %710 = vmatprep.mubr.f32.mxu1 (!%p348_p2), %v3828_v4  ;;  %v3926_v6 = vld [vmem:[%s4713_s3 + $0x18] sm:$0xff] (!%p348_p2)  ;;  %v3932_v7 = vcombine.high (!%p348_p2), %v3921_v5, %v3921_v5  ;;  %vm491_vm1 = vcmask (!%p348_p2), 31744   ;;  %v1117_v17 = vld [vmem:[%s4715_s5] sm:$0xff] (!%p348_p2)  ;;  %v1119_v19 = vld [vmem:[%s4715_s5 + $0x10] sm:$0xff] (!%p348_p2) }
   0x7   : > { %v3936_v8 = vcombine.high (!%p348_p2), %v3926_v6, %v3926_v6  ;;  %v3829_v18 = vmov (!%p348_p2), 0   ;;  %v1118_v20 = vld [vmem:[%s4715_s5 + $0x8] sm:$0xff] (!%p348_p2)  ;;  %v1120_v21 = vld [vmem:[%s4715_s5 + $0x18] sm:$0xff] (!%p348_p2)  ;;  %v2579_v22 = vld [vmem:[%s4718_s8] sm:$0xff] (!%p348_p2)  ;;  %vm1141_vm2 = vcmask (!%p348_p2), 523264   ;;  %vm2034_vm3 = vcmask (!%p348_p2), 261120  }
   0x8   : > { %3395 = vmatprep.subr.msk.mxu0 (!%p348_p2), %vm516_vm0, %v3910_v2  ;;  %3405 = vmatprep.subr.msk.mxu1 (!%p348_p2), %vm516_vm0, %v3914_v3  ;;  %v2580_v23 = vld [vmem:[%s4718_s8 + $0x8] sm:$0xff] (!%p348_p2)  ;;  %v2581_v24 = vld [vmem:[%s4718_s8 + $0x10] sm:$0xff] (!%p348_p2)  ;;  %v2582_v25 = vld [vmem:[%s4718_s8 + $0x18] sm:$0xff] (!%p348_p2) }
   0x9   : > { %3396 = vmatpush1.msk.msra.mxu0 (!%p348_p2), %vm516_vm0, %v3901_v0  ;;  %3406 = vmatpush1.msk.msra.mxu1 (!%p348_p2), %vm516_vm0, %v3906_v1  ;;  %v3004_v26 = vld [vmem:[%s4720_s10] sm:$0x7] (!%p348_p2)  ;;  %v413_v29 = vld [vmem:[%s4712_s2 + $0x10] sm:$0xff] (!%p348_p2)  ;;  %v412_v31 = vld [vmem:[%s4712_s2 + $0x8] sm:$0xff] (!%p348_p2) }
   0xa   : > { %3415 = vmatprep.subr.msk.mxu0 (!%p348_p2), %vm516_vm0, %v3932_v7  ;;  %3425 = vmatprep.subr.msk.mxu1 (!%p348_p2), %vm516_vm0, %v3936_v8  ;;  %v411_v27 = vld [vmem:[%s4712_s2] sm:$0xff] (!%p348_p2)  ;;  %v414_v33 = vld [vmem:[%s4712_s2 + $0x18] sm:$0xff] (!%p348_p2)  ;;  %v421_v36 = vld [vmem:[%s4712_s2 + $0x50] sm:$0xff] (!%p348_p2) }
   0xb   : > { %3814 = vset.pattern.permute.xlu0 (!%p348_p2), %v3829_v18  ;;  %3815 = vset.pattern.permute.xlu1 (!%p348_p2), %v3829_v18  ;;  %v419_v35 = vld [vmem:[%s4712_s2 + $0x40] sm:$0xff] (!%p348_p2)  ;;  %v420_v39 = vld [vmem:[%s4712_s2 + $0x48] sm:$0xff] (!%p348_p2)  ;;  %v422_v40 = vld [vmem:[%s4712_s2 + $0x58] sm:$0xff] (!%p348_p2) }
   0xc   : > { %1123 = vperm.xlu0 (!%p348_p2), %3814, %v1117_v17   ;;  %1133 = vperm.xlu1 (!%p348_p2), %3815, %v1119_v19   ;;  %v427_v55 = vld [vmem:[%s4712_s2 + $0x80] sm:$0xff] (!%p348_p2)  ;;  %v429_v56 = vld [vmem:[%s4712_s2 + $0x90] sm:$0xff] (!%p348_p2) }
   0xd   : > { %s4723_s18 = smov (!%p392_p3, %s3384_s18), 1  ;;  %v437_v17 = vld [vmem:[%s4712_s2 + $0xd0] sm:$0xff] }
   0xe   : > { %s3545_s27 = sshll.u32 %s4723_s18, 6  ;;  %s3547_s19 = sshll.u32 %s4723_s18, 5 }
   0xf   : > { %s3952_s30 = scalar_lea.vmem %s4710_s0, %s3545_s27  ;;  %s4332_s26 = scalar_lea.vmem %s4711_s1, %s3545_s27 }
  0x10   : > { %v475_v9 = vld [vmem:[%s3952_s30] sm:$0xff]  ;;  %v476_v10 = vld [vmem:[%s3952_s30 + $0x8] sm:$0xff]  ;;  %v477_v11 = vld [vmem:[%s3952_s30 + $0x10] sm:$0xff]  ;;  %1128 = vperm.xlu0 %3814, %v1118_v20   ;;  %1138 = vperm.xlu1 %3815, %v1120_v21   ;;  %s406_s22 = scalar_lea.vmem %s4721_s11, %s3547_s19 }
  0x11   : > { %3397 = vmatmul.mubr.msk.f32.vlgmr.msra.gmra.mrb[0].mxu0 %vm491_vm1, %v475_v9  ;;  %3407 = vmatmul.mubr.msk.f32.vlgmr.msra.gmra.mrb[0].mxu1 %vm491_vm1, %v475_v9  ;;  %v478_v12 = vld [vmem:[%s3952_s30 + $0x18] sm:$0xff]  ;;  %v479_v13 = vld [vmem:[%s3952_s30 + $0x20] sm:$0xff]  ;;  %v480_v14 = vld [vmem:[%s3952_s30 + $0x28] sm:$0xff] }
  0x12   : > { %603 = vmatprep.mubr.f32.mxu0 %v3828_v4  ;;  %716 = vmatprep.mubr.f32.mxu1 %v3828_v4  ;;  %v481_v15 = vld [vmem:[%s3952_s30 + $0x30] sm:$0xff]  ;;  %v482_v16 = vld [vmem:[%s3952_s30 + $0x38] sm:$0xff]  ;;  %v436_v20 = vld [vmem:[%s4712_s2 + $0xc8] sm:$0xff] }
  0x13   : > { %3416 = vmatpush1.msk.msra.mxu0 %vm516_vm0, %v3921_v5  ;;  %3426 = vmatpush1.msk.msra.mxu1 %vm516_vm0, %v3926_v6  ;;  %v438_v21 = vld [vmem:[%s4712_s2 + $0xd8] sm:$0xff] }
  0x14   : > { %2585 = vperm.xlu0 %3814, %v2579_v22   ;;  %2590 = vperm.xlu1 %3815, %v2580_v23  }
  0x15   : > { %3398 = vmatmul.mubr.msk.f32.gmra.mrb[2].mxu0 %vm491_vm1, %v476_v10  ;;  %3408 = vmatmul.mubr.msk.f32.gmra.mrb[2].mxu1 %vm491_vm1, %v476_v10 }
  0x16   : > { %609 = vmatprep.mubr.f32.mxu0 %v3828_v4  ;;  %722 = vmatprep.mubr.f32.mxu1 %v3828_v4 }
  0x18   : > { %2595 = vperm.xlu0 %3814, %v2581_v24   ;;  %2600 = vperm.xlu1 %3815, %v2582_v25  }
  0x19   : > { %3399 = vmatmul.mubr.msk.f32.gmra.mrb[4].mxu0 %vm491_vm1, %v477_v11  ;;  %3409 = vmatmul.mubr.msk.f32.gmra.mrb[4].mxu1 %vm491_vm1, %v477_v11 }
  0x1a   : > { %615 = vmatprep.mubr.f32.mxu0 %v3828_v4  ;;  %728 = vmatprep.mubr.f32.mxu1 %v3828_v4 }
  0x1c   : > { %3007 = vperm.xlu0 %3814, %v3004_v26  }
  0x1d   : > { %3400 = vmatmul.mubr.msk.f32.gmra.mrb[6].mxu0 %vm491_vm1, %v478_v12  ;;  %3410 = vmatmul.mubr.msk.f32.gmra.mrb[6].mxu1 %vm491_vm1, %v478_v12 }
  0x1e   : > { %621 = vmatprep.mubr.f32.mxu0 %v3828_v4  ;;  %734 = vmatprep.mubr.f32.mxu1 %v3828_v4 }
  0x21   : > { %3401 = vmatmul.mubr.msk.f32.gmra.mrb[8].mxu0 %vm491_vm1, %v479_v13  ;;  %3411 = vmatmul.mubr.msk.f32.gmra.mrb[8].mxu1 %vm491_vm1, %v479_v13 }
  0x22   : > { %627 = vmatprep.mubr.f32.mxu0 %v3828_v4  ;;  %740 = vmatprep.mubr.f32.mxu1 %v3828_v4 }
  0x25   : > { %3402 = vmatmul.mubr.msk.f32.gmra.mrb[10].mxu0 %vm491_vm1, %v480_v14  ;;  %3412 = vmatmul.mubr.msk.f32.gmra.mrb[10].mxu1 %vm491_vm1, %v480_v14 }
  0x26   : > { %633 = vmatprep.mubr.f32.mxu0 %v3828_v4  ;;  %746 = vmatprep.mubr.f32.mxu1 %v3828_v4 }
  0x29   : > { %3403 = vmatmul.mubr.msk.f32.gmra.mrb[12].mxu0 %vm491_vm1, %v481_v15  ;;  %3413 = vmatmul.mubr.msk.f32.gmra.mrb[12].mxu1 %vm491_vm1, %v481_v15 }
  0x2a   : > { %639 = vmatprep.mubr.f32.mxu0 %v3828_v4  ;;  %752 = vmatprep.mubr.f32.mxu1 %v3828_v4 }
  0x2d   : > { %3404 = vmatmul.mubr.msk.f32.gmra.mrb[14].mxu0 %vm491_vm1, %v482_v16  ;;  %3414 = vmatmul.mubr.msk.f32.gmra.mrb[14].mxu1 %vm491_vm1, %v482_v16 }
  0x2e   : > { %823 = vmatprep.mubr.f32.mxu0 %v3828_v4  ;;  %936 = vmatprep.mubr.f32.mxu1 %v3828_v4 }
  0x31   : > { %3417 = vmatmul.mubr.msk.f32.vlgmr.msra.gmra.mrb[16].mxu0 %vm491_vm1, %v475_v9  ;;  %3427 = vmatmul.mubr.msk.f32.vlgmr.msra.gmra.mrb[16].mxu1 %vm491_vm1, %v475_v9 }
  0x32   : > { %829 = vmatprep.mubr.f32.mxu0 %v3828_v4  ;;  %942 = vmatprep.mubr.f32.mxu1 %v3828_v4 }
  0x35   : > { %3418 = vmatmul.mubr.msk.f32.gmra.mrb[18].mxu0 %vm491_vm1, %v476_v10  ;;  %3428 = vmatmul.mubr.msk.f32.gmra.mrb[18].mxu1 %vm491_vm1, %v476_v10  ;;  %v428_v10 = vld [vmem:[%s4712_s2 + $0x88] sm:$0xff] }
  0x36   : > { %835 = vmatprep.mubr.f32.mxu0 %v3828_v4  ;;  %948 = vmatprep.mubr.f32.mxu1 %v3828_v4 }
  0x39   : > { %3419 = vmatmul.mubr.msk.f32.gmra.mrb[20].mxu0 %vm491_vm1, %v477_v11  ;;  %3429 = vmatmul.mubr.msk.f32.gmra.mrb[20].mxu1 %vm491_vm1, %v477_v11 }
  0x3a   : > { %841 = vmatprep.mubr.f32.mxu0 %v3828_v4  ;;  %954 = vmatprep.mubr.f32.mxu1 %v3828_v4 }
  0x3d   : > { %3420 = vmatmul.mubr.msk.f32.gmra.mrb[22].mxu0 %vm491_vm1, %v478_v12  ;;  %3430 = vmatmul.mubr.msk.f32.gmra.mrb[22].mxu1 %vm491_vm1, %v478_v12  ;;  %v430_v12 = vld [vmem:[%s4712_s2 + $0x98] sm:$0xff] }
  0x3e   : > { %847 = vmatprep.mubr.f32.mxu0 %v3828_v4  ;;  %960 = vmatprep.mubr.f32.mxu1 %v3828_v4 }
  0x41   : > { %3421 = vmatmul.mubr.msk.f32.gmra.mrb[24].mxu0 %vm491_vm1, %v479_v13  ;;  %3431 = vmatmul.mubr.msk.f32.gmra.mrb[24].mxu1 %vm491_vm1, %v479_v13 }
  0x42   : > { %853 = vmatprep.mubr.f32.mxu0 %v3828_v4  ;;  %966 = vmatprep.mubr.f32.mxu1 %v3828_v4 }
  0x45   : > { %3422 = vmatmul.mubr.msk.f32.gmra.mrb[26].mxu0 %vm491_vm1, %v480_v14  ;;  %3432 = vmatmul.mubr.msk.f32.gmra.mrb[26].mxu1 %vm491_vm1, %v480_v14 }
  0x46   : > { %859 = vmatprep.mubr.f32.mxu0 %v3828_v4  ;;  %972 = vmatprep.mubr.f32.mxu1 %v3828_v4 }
  0x49   : > { %3423 = vmatmul.mubr.msk.f32.gmra.mrb[28].mxu0 %vm491_vm1, %v481_v15  ;;  %3433 = vmatmul.mubr.msk.f32.gmra.mrb[28].mxu1 %vm491_vm1, %v481_v15 }
  0x4a   : > { %865 = vmatprep.mubr.f32.mxu0 %v3828_v4  ;;  %978 = vmatprep.mubr.f32.mxu1 %v3828_v4 }
  0x4d   : > { %3424 = vmatmul.mubr.msk.f32.gmra.mrb[30].mxu0 %vm491_vm1, %v482_v16  ;;  %3434 = vmatmul.mubr.msk.f32.gmra.mrb[30].mxu1 %vm491_vm1, %v482_v16  ;;  %v435_v16 = vld [vmem:[%s4712_s2 + $0xc0] sm:$0xff] }
  0x4e   : > { %1218 = vmatprep.mubr.f32.mxu0 %v3828_v4  ;;  %1307 = vmatprep.mubr.f32.mxu1 %v3828_v4 }
  0xe4   : > { %v599_v28 = vpop.f32.mrb[0].mxu0  ;;  %v712_v30 = vpop.f32.mrb[0].mxu1 }
  0xe5   : > { %v601_v32 = vpop.f32.mrb[1].mxu0  ;;  %v714_v34 = vpop.f32.mrb[1].mxu1  ;;  %v985_v37 = vadd.f32 %v599_v28, %v411_v27  ;;  %v987_v38 = vadd.f32 %v712_v30, %v413_v29 }
  0xe6   : > { %v986_v41 = vadd.f32 %v601_v32, %v412_v31  ;;  %v988_v42 = vadd.f32 %v714_v34, %v414_v33 }
  0xe7   : > { %v1049_v51 = vmax.f32 %v985_v37, 0.0  ;;  %v1051_v52 = vmax.f32 %v987_v38, 0.0  ;;  %v445_v37 = vld [vmem:[%s4712_s2 + $0x110] sm:$0xff] }
  0xe8   : > { %v605_v43 = vpop.f32.mrb[2].mxu0  ;;  %v718_v44 = vpop.f32.mrb[2].mxu1  ;;  %v1050_v57 = vmax.f32 %v986_v41, 0.0  ;;  %v1052_v58 = vmax.f32 %v988_v42, 0.0 }
  0xe9   : > { %v993_v45 = vadd.f32 %v605_v43, %v419_v35  ;;  %v995_v46 = vadd.f32 %v718_v44, %v421_v36  ;;  %v607_v47 = vpop.f32.mrb[3].mxu0  ;;  %v720_v48 = vpop.f32.mrb[3].mxu1  ;;  %v443_v36 = vld [vmem:[%s4712_s2 + $0x100] sm:$0xff] }
  0xea   : > { %v994_v49 = vadd.f32 %v607_v47, %v420_v39  ;;  %v996_v50 = vadd.f32 %v720_v48, %v422_v40  ;;  %v446_v48 = vld [vmem:[%s4712_s2 + $0x118] sm:$0xff] }
  0xeb   : > { %v1057_v53 = vmax.f32 %v993_v45, 0.0  ;;  %v1059_v54 = vmax.f32 %v995_v46, 0.0  ;;  %v444_v46 = vld [vmem:[%s4712_s2 + $0x108] sm:$0xff] }
  0xec   : > { %v1058_v59 = vmax.f32 %v994_v49, 0.0  ;;  %v1060_v60 = vmax.f32 %v996_v50, 0.0  ;;  %v611_v61 = vpop.f32.mrb[4].mxu0  ;;  %v724_v62 = vpop.f32.mrb[4].mxu1 }
  0xed   : > { %v3550_v63 = vpack.c.bf16 %v1057_v53, %v1049_v51  ;;  %v3566_v9 = vpack.c.bf16 %v1059_v54, %v1051_v52  ;;  %v613_v11 = vpop.f32.mrb[5].mxu0  ;;  %v726_v13 = vpop.f32.mrb[5].mxu1  ;;  %v1001_v18 = vadd.f32 %v611_v61, %v427_v55  ;;  %v1003_v19 = vadd.f32 %v724_v62, %v429_v56  ;;  %v451_v52 = vld [vmem:[%s4712_s2 + $0x140] sm:$0xff]  ;;  %v453_v53 = vld [vmem:[%s4712_s2 + $0x150] sm:$0xff]  ;;  %v452_v56 = vld [vmem:[%s4712_s2 + $0x148] sm:$0xff] }
  0xee   : > { %v3548_v14 = vpack.c.bf16 %v1058_v59, %v1050_v57  ;;  %v3564_v15 = vpack.c.bf16 %v1060_v60, %v1052_v58  ;;  %v1002_v22 = vadd.f32 %v613_v11, %v428_v10  ;;  %v1004_v23 = vadd.f32 %v726_v13, %v430_v12  ;;  %v454_v57 = vld [vmem:[%s4712_s2 + $0x158] sm:$0xff] }
  0xef   : > { %v1065_v32 = vmax.f32 %v1001_v18, 0.0  ;;  %v1067_v33 = vmax.f32 %v1003_v19, 0.0  ;;  %v461_v18 = vld [vmem:[%s4712_s2 + $0x190] sm:$0xff] }
  0xf0   : > { %v617_v24 = vpop.f32.mrb[6].mxu0  ;;  %v730_v25 = vpop.f32.mrb[6].mxu1  ;;  %3549 = vmatprep.subr.bf16.mxu0 %v3548_v14  ;;  %3565 = vmatprep.subr.bf16.mxu1 %v3564_v15  ;;  %v1066_v38 = vmax.f32 %v1002_v22, 0.0  ;;  %v1068_v39 = vmax.f32 %v1004_v23, 0.0 }
  0xf1   : > { %v1009_v26 = vadd.f32 %v617_v24, %v435_v16  ;;  %v1011_v27 = vadd.f32 %v730_v25, %v437_v17  ;;  %v619_v28 = vpop.f32.mrb[7].mxu0  ;;  %v732_v29 = vpop.f32.mrb[7].mxu1  ;;  %3551 = vmatpush1.bf16.msra.mxu0 %v3550_v63  ;;  %3567 = vmatpush1.bf16.msra.mxu1 %v3566_v9  ;;  %v459_v17 = vld [vmem:[%s4712_s2 + $0x180] sm:$0xff] }
  0xf2   : > { %v1010_v30 = vadd.f32 %v619_v28, %v436_v20  ;;  %v1012_v31 = vadd.f32 %v732_v29, %v438_v21  ;;  %v462_v29 = vld [vmem:[%s4712_s2 + $0x198] sm:$0xff] }
  0xf3   : > { %v1073_v34 = vmax.f32 %v1009_v26, 0.0  ;;  %v1075_v35 = vmax.f32 %v1011_v27, 0.0  ;;  %v460_v27 = vld [vmem:[%s4712_s2 + $0x188] sm:$0xff] }
  0xf4   : > { %v1074_v40 = vmax.f32 %v1010_v30, 0.0  ;;  %v1076_v41 = vmax.f32 %v1012_v31, 0.0  ;;  %v623_v42 = vpop.f32.mrb[8].mxu0  ;;  %v736_v43 = vpop.f32.mrb[8].mxu1 }
  0xf5   : > { %v3554_v44 = vpack.c.bf16 %v1073_v34, %v1065_v32  ;;  %v3570_v45 = vpack.c.bf16 %v1075_v35, %v1067_v33  ;;  %v625_v47 = vpop.f32.mrb[9].mxu0  ;;  %v738_v49 = vpop.f32.mrb[9].mxu1  ;;  %v1017_v54 = vadd.f32 %v623_v42, %v443_v36  ;;  %v1019_v55 = vadd.f32 %v736_v43, %v445_v37  ;;  %v467_v33 = vld [vmem:[%s4712_s2 + $0x1c0] sm:$0xff]  ;;  %v469_v34 = vld [vmem:[%s4712_s2 + $0x1d0] sm:$0xff]  ;;  %v468_v37 = vld [vmem:[%s4712_s2 + $0x1c8] sm:$0xff] }
  0xf6   : > { %v3552_v50 = vpack.c.bf16 %v1074_v40, %v1066_v38  ;;  %v3568_v51 = vpack.c.bf16 %v1076_v41, %v1068_v39  ;;  %v1018_v58 = vadd.f32 %v625_v47, %v444_v46  ;;  %v1020_v59 = vadd.f32 %v738_v49, %v446_v48  ;;  %v470_v38 = vld [vmem:[%s4712_s2 + $0x1d8] sm:$0xff] }
  0xf7   : > { %v1081_v13 = vmax.f32 %v1017_v54, 0.0  ;;  %v1083_v14 = vmax.f32 %v1019_v55, 0.0  ;;  %v417_v54 = vld [vmem:[%s4712_s2 + $0x30] sm:$0xff] }
  0xf8   : > { %v629_v60 = vpop.f32.mrb[10].mxu0  ;;  %v742_v61 = vpop.f32.mrb[10].mxu1  ;;  %3553 = vmatprep.subr.bf16.mxu0 %v3552_v50  ;;  %3569 = vmatprep.subr.bf16.mxu1 %v3568_v51  ;;  %v1082_v19 = vmax.f32 %v1018_v58, 0.0  ;;  %v1084_v20 = vmax.f32 %v1020_v59, 0.0 }
  0xf9   : > { %v1025_v62 = vadd.f32 %v629_v60, %v451_v52  ;;  %v1027_v63 = vadd.f32 %v742_v61, %v453_v53  ;;  %v631_v9 = vpop.f32.mrb[11].mxu0  ;;  %v744_v10 = vpop.f32.mrb[11].mxu1  ;;  %3555 = vmatpush1.bf16.msra.mxu0 %v3554_v44  ;;  %3571 = vmatpush1.bf16.msra.mxu1 %v3570_v45  ;;  %v415_v53 = vld [vmem:[%s4712_s2 + $0x20] sm:$0xff] }
  0xfa   : > { %v1026_v11 = vadd.f32 %v631_v9, %v452_v56  ;;  %v1028_v12 = vadd.f32 %v744_v10, %v454_v57  ;;  %v418_v10 = vld [vmem:[%s4712_s2 + $0x38] sm:$0xff] }
  0xfb   : > { %v1089_v15 = vmax.f32 %v1025_v62, 0.0  ;;  %v1091_v16 = vmax.f32 %v1027_v63, 0.0  ;;  %v416_v63 = vld [vmem:[%s4712_s2 + $0x28] sm:$0xff] }
  0xfc   : > { %v1090_v21 = vmax.f32 %v1026_v11, 0.0  ;;  %v1092_v22 = vmax.f32 %v1028_v12, 0.0  ;;  %v635_v23 = vpop.f32.mrb[12].mxu0  ;;  %v748_v24 = vpop.f32.mrb[12].mxu1 }
  0xfd   : > { %v3558_v25 = vpack.c.bf16 %v1089_v15, %v1081_v13  ;;  %v3574_v26 = vpack.c.bf16 %v1091_v16, %v1083_v14  ;;  %v637_v28 = vpop.f32.mrb[13].mxu0  ;;  %v750_v30 = vpop.f32.mrb[13].mxu1  ;;  %v1033_v35 = vadd.f32 %v635_v23, %v459_v17  ;;  %v1035_v36 = vadd.f32 %v748_v24, %v461_v18  ;;  %v423_v14 = vld [vmem:[%s4712_s2 + $0x60] sm:$0xff]  ;;  %v425_v15 = vld [vmem:[%s4712_s2 + $0x70] sm:$0xff]  ;;  %v424_v18 = vld [vmem:[%s4712_s2 + $0x68] sm:$0xff] }
  0xfe   : > { %v3556_v31 = vpack.c.bf16 %v1090_v21, %v1082_v19  ;;  %v3572_v32 = vpack.c.bf16 %v1092_v22, %v1084_v20  ;;  %v1034_v39 = vadd.f32 %v637_v28, %v460_v27  ;;  %v1036_v40 = vadd.f32 %v750_v30, %v462_v29  ;;  %v426_v19 = vld [vmem:[%s4712_s2 + $0x78] sm:$0xff]  ;;  %v4184_v28 = vld [vmem:[%s4714_s4] sm:$0xff] }
  0xff   : > { %v1097_v49 = vmax.f32 %v1033_v35, 0.0  ;;  %v1099_v50 = vmax.f32 %v1035_v36, 0.0  ;;  %v431_v35 = vld [vmem:[%s4712_s2 + $0xa0] sm:$0xff]  ;;  %v433_v36 = vld [vmem:[%s4712_s2 + $0xb0] sm:$0xff] }
 0x100   : > { %v641_v41 = vpop.f32.mrb[14].mxu0  ;;  %v754_v42 = vpop.f32.mrb[14].mxu1  ;;  %3557 = vmatprep.subr.bf16.mxu0 %v3556_v31  ;;  %3573 = vmatprep.subr.bf16.mxu1 %v3572_v32  ;;  %v1098_v55 = vmax.f32 %v1034_v39, 0.0  ;;  %v1100_v56 = vmax.f32 %v1036_v40, 0.0 }
 0x101   : > { %v1041_v43 = vadd.f32 %v641_v41, %v467_v33  ;;  %v1043_v44 = vadd.f32 %v754_v42, %v469_v34  ;;  %v643_v45 = vpop.f32.mrb[15].mxu0  ;;  %v756_v46 = vpop.f32.mrb[15].mxu1  ;;  %3559 = vmatpush1.bf16.msra.mxu0 %v3558_v25  ;;  %3575 = vmatpush1.bf16.msra.mxu1 %v3574_v26 }
 0x102   : > { %v1042_v47 = vadd.f32 %v643_v45, %v468_v37  ;;  %v1044_v48 = vadd.f32 %v756_v46, %v470_v38  ;;  %v432_v45 = vld [vmem:[%s4712_s2 + $0xa8] sm:$0xff] }
 0x103   : > { %v1105_v51 = vmax.f32 %v1041_v43, 0.0  ;;  %v1107_v52 = vmax.f32 %v1043_v44, 0.0 }
 0x104   : > { %v1106_v57 = vmax.f32 %v1042_v47, 0.0  ;;  %v1108_v58 = vmax.f32 %v1044_v48, 0.0  ;;  %v825_v59 = vpop.f32.mrb[16].mxu0  ;;  %v938_v60 = vpop.f32.mrb[16].mxu1  ;;  %v434_v47 = vld [vmem:[%s4712_s2 + $0xb8] sm:$0xff] }
 0x105   : > { %v3562_v61 = vpack.c.bf16 %v1105_v51, %v1097_v49  ;;  %v3578_v62 = vpack.c.bf16 %v1107_v52, %v1099_v50  ;;  %v827_v9 = vpop.f32.mrb[17].mxu0  ;;  %v940_v11 = vpop.f32.mrb[17].mxu1  ;;  %v989_v16 = vadd.f32 %v825_v59, %v415_v53  ;;  %v991_v17 = vadd.f32 %v938_v60, %v417_v54  ;;  %v4206_v49 = vld [vmem:[%s4714_s4 + $0x8] sm:$0xff]  ;;  %v439_v52 = vld [vmem:[%s4712_s2 + $0xe0] sm:$0xff]  ;;  %v441_v53 = vld [vmem:[%s4712_s2 + $0xf0] sm:$0xff] }
 0x106   : > { %v3560_v12 = vpack.c.bf16 %v1106_v57, %v1098_v55  ;;  %v3576_v13 = vpack.c.bf16 %v1108_v58, %v1100_v56  ;;  %v990_v20 = vadd.f32 %v827_v9, %v416_v63  ;;  %v992_v21 = vadd.f32 %v940_v11, %v418_v10  ;;  %v440_v56 = vld [vmem:[%s4712_s2 + $0xe8] sm:$0xff]  ;;  %v442_v57 = vld [vmem:[%s4712_s2 + $0xf8] sm:$0xff]  ;;  %v4228_v11 = vld [vmem:[%s4714_s4 + $0x10] sm:$0xff] }
 0x107   : > { %v1053_v31 = vmax.f32 %v989_v16, 0.0  ;;  %v1055_v32 = vmax.f32 %v991_v17, 0.0 }
 0x108   : > { %v831_v22 = vpop.f32.mrb[18].mxu0  ;;  %v944_v23 = vpop.f32.mrb[18].mxu1  ;;  %3561 = vmatprep.subr.bf16.mxu0 %v3560_v12  ;;  %3577 = vmatprep.subr.bf16.mxu1 %v3576_v13  ;;  %v1054_v37 = vmax.f32 %v990_v20, 0.0  ;;  %v1056_v38 = vmax.f32 %v992_v21, 0.0 }
 0x109   : > { %v997_v24 = vadd.f32 %v831_v22, %v423_v14  ;;  %v999_v25 = vadd.f32 %v944_v23, %v425_v15  ;;  %v833_v26 = vpop.f32.mrb[19].mxu0  ;;  %v946_v27 = vpop.f32.mrb[19].mxu1  ;;  %3563 = vmatpush1.bf16.msra.mxu0 %v3562_v61  ;;  %3579 = vmatpush1.bf16.msra.mxu1 %v3578_v62 }
 0x10a   : > { %v998_v29 = vadd.f32 %v833_v26, %v424_v18  ;;  %v1000_v30 = vadd.f32 %v946_v27, %v426_v19  ;;  %v447_v18 = vld [vmem:[%s4712_s2 + $0x120] sm:$0xff]  ;;  %v449_v19 = vld [vmem:[%s4712_s2 + $0x130] sm:$0xff] }
 0x10b   : > { %v1061_v33 = vmax.f32 %v997_v24, 0.0  ;;  %v1063_v34 = vmax.f32 %v999_v25, 0.0 }
 0x10c   : > { %v1062_v39 = vmax.f32 %v998_v29, 0.0  ;;  %v1064_v40 = vmax.f32 %v1000_v30, 0.0  ;;  %v837_v41 = vpop.f32.mrb[20].mxu0  ;;  %v950_v42 = vpop.f32.mrb[20].mxu1  ;;  %3435 = vmatmul.mubr.msk.f32.vlgmr.msra.gmra.mrb[32].mxu0 %vm1141_vm2, %v4184_v28  ;;  %3439 = vmatmul.mubr.msk.f32.vlgmr.msra.gmra.mrb[32].mxu1 %vm1141_vm2, %v4184_v28  ;;  %v448_v29 = vld [vmem:[%s4712_s2 + $0x128] sm:$0xff] }
 0x10d   : > { %v3582_v43 = vpack.c.bf16 %v1061_v33, %v1053_v31  ;;  %v3598_v44 = vpack.c.bf16 %v1063_v34, %v1055_v32  ;;  %v839_v46 = vpop.f32.mrb[21].mxu0  ;;  %v952_v48 = vpop.f32.mrb[21].mxu1  ;;  %1224 = vmatprep.mubr.f32.mxu0 %v3828_v4  ;;  %1313 = vmatprep.mubr.f32.mxu1 %v3828_v4  ;;  %v1005_v54 = vadd.f32 %v837_v41, %v431_v35  ;;  %v450_v31 = vld [vmem:[%s4712_s2 + $0x138] sm:$0xff] }
 0x10e   : > { %v3580_v50 = vpack.c.bf16 %v1062_v39, %v1054_v37  ;;  %v3596_v51 = vpack.c.bf16 %v1064_v40, %v1056_v38  ;;  %v1007_v55 = vadd.f32 %v950_v42, %v433_v36  ;;  %v1006_v58 = vadd.f32 %v839_v46, %v432_v45  ;;  %v4252_v33 = vld [vmem:[%s4714_s4 + $0x18] sm:$0xff]  ;;  %v455_v36 = vld [vmem:[%s4712_s2 + $0x160] sm:$0xff]  ;;  %v457_v37 = vld [vmem:[%s4712_s2 + $0x170] sm:$0xff] }
 0x10f   : > { %v1008_v59 = vadd.f32 %v952_v48, %v434_v47  ;;  %v1069_v14 = vmax.f32 %v1005_v54, 0.0  ;;  %v456_v40 = vld [vmem:[%s4712_s2 + $0x168] sm:$0xff]  ;;  %v458_v41 = vld [vmem:[%s4712_s2 + $0x178] sm:$0xff] }
 0x110   : > { %v843_v60 = vpop.f32.mrb[22].mxu0  ;;  %v956_v61 = vpop.f32.mrb[22].mxu1  ;;  %3436 = vmatmul.mubr.msk.f32.gmra.mrb[34].mxu0 %vm1141_vm2, %v4206_v49  ;;  %3440 = vmatmul.mubr.msk.f32.gmra.mrb[34].mxu1 %vm1141_vm2, %v4206_v49  ;;  %v1071_v15 = vmax.f32 %v1007_v55, 0.0  ;;  %v1070_v20 = vmax.f32 %v1006_v58, 0.0  ;;  %v465_v58 = vld [vmem:[%s4712_s2 + $0x1b0] sm:$0xff] }
 0x111   : > { %v1013_v62 = vadd.f32 %v843_v60, %v439_v52  ;;  %v1015_v63 = vadd.f32 %v956_v61, %v441_v53  ;;  %3581 = vmatprep.subr.bf16.mxu0 %v3580_v50  ;;  %3597 = vmatprep.subr.bf16.mxu1 %v3596_v51  ;;  %v845_v9 = vpop.f32.mrb[23].mxu0  ;;  %v958_v10 = vpop.f32.mrb[23].mxu1  ;;  %v1072_v21 = vmax.f32 %v1008_v59, 0.0 }
 0x112   : > { %v1014_v12 = vadd.f32 %v845_v9, %v440_v56  ;;  %v1016_v13 = vadd.f32 %v958_v10, %v442_v57  ;;  %3583 = vmatpush1.bf16.msra.mxu0 %v3582_v43  ;;  %3599 = vmatpush1.bf16.msra.mxu1 %v3598_v44  ;;  %v463_v57 = vld [vmem:[%s4712_s2 + $0x1a0] sm:$0xff] }
 0x113   : > { %v1077_v16 = vmax.f32 %v1013_v62, 0.0  ;;  %v1079_v17 = vmax.f32 %v1015_v63, 0.0  ;;  %1230 = vmatprep.mubr.f32.mxu0 %v3828_v4  ;;  %1319 = vmatprep.mubr.f32.mxu1 %v3828_v4 }
 0x114   : > { %v1078_v22 = vmax.f32 %v1014_v12, 0.0  ;;  %v1080_v23 = vmax.f32 %v1016_v13, 0.0  ;;  %v849_v24 = vpop.f32.mrb[24].mxu0  ;;  %v962_v25 = vpop.f32.mrb[24].mxu1  ;;  %3437 = vmatmul.mubr.msk.f32.gmra.mrb[36].mxu0 %vm1141_vm2, %v4228_v11  ;;  %3441 = vmatmul.mubr.msk.f32.gmra.mrb[36].mxu1 %vm1141_vm2, %v4228_v11  ;;  %v464_v13 = vld [vmem:[%s4712_s2 + $0x1a8] sm:$0xff] }
 0x115   : > { %v3586_v26 = vpack.c.bf16 %v1077_v16, %v1069_v14  ;;  %v3602_v27 = vpack.c.bf16 %v1079_v17, %v1071_v15  ;;  %v851_v30 = vpop.f32.mrb[25].mxu0  ;;  %v964_v32 = vpop.f32.mrb[25].mxu1  ;;  %1236 = vmatprep.mubr.f32.mxu0 %v3828_v4  ;;  %1325 = vmatprep.mubr.f32.mxu1 %v3828_v4  ;;  %v1021_v38 = vadd.f32 %v849_v24, %v447_v18  ;;  %v466_v15 = vld [vmem:[%s4712_s2 + $0x1b8] sm:$0xff] }
 0x116   : > { %v3584_v34 = vpack.c.bf16 %v1078_v22, %v1070_v20  ;;  %v3600_v35 = vpack.c.bf16 %v1080_v23, %v1072_v21  ;;  %v1023_v39 = vadd.f32 %v962_v25, %v449_v19  ;;  %v1022_v42 = vadd.f32 %v851_v30, %v448_v29  ;;  %v471_v19 = vld [vmem:[%s4712_s2 + $0x1e0] sm:$0xff]  ;;  %v473_v20 = vld [vmem:[%s4712_s2 + $0x1f0] sm:$0xff]  ;;  %v472_v23 = vld [vmem:[%s4712_s2 + $0x1e8] sm:$0xff] }
 0x117   : > { %v1024_v43 = vadd.f32 %v964_v32, %v450_v31  ;;  %v1085_v53 = vmax.f32 %v1021_v38, 0.0  ;;  %v474_v24 = vld [vmem:[%s4712_s2 + $0x1f8] sm:$0xff] }
 0x118   : > { %v855_v44 = vpop.f32.mrb[26].mxu0  ;;  %v968_v45 = vpop.f32.mrb[26].mxu1  ;;  %3438 = vmatmul.mubr.msk.f32.gmra.mrb[38].mxu0 %vm1141_vm2, %v4252_v33  ;;  %3442 = vmatmul.mubr.msk.f32.gmra.mrb[38].mxu1 %vm1141_vm2, %v4252_v33  ;;  %v1087_v54 = vmax.f32 %v1023_v39, 0.0  ;;  %v1086_v59 = vmax.f32 %v1022_v42, 0.0 }
 0x119   : > { %v1029_v46 = vadd.f32 %v855_v44, %v455_v36  ;;  %v1031_v47 = vadd.f32 %v968_v45, %v457_v37  ;;  %3585 = vmatprep.subr.bf16.mxu0 %v3584_v34  ;;  %3601 = vmatprep.subr.bf16.mxu1 %v3600_v35  ;;  %v857_v48 = vpop.f32.mrb[27].mxu0  ;;  %v970_v50 = vpop.f32.mrb[27].mxu1  ;;  %v1088_v60 = vmax.f32 %v1024_v43, 0.0 }
 0x11a   : > { %v1030_v51 = vadd.f32 %v857_v48, %v456_v40  ;;  %v1032_v52 = vadd.f32 %v970_v50, %v458_v41  ;;  %3587 = vmatpush1.bf16.msra.mxu0 %v3586_v26  ;;  %3603 = vmatpush1.bf16.msra.mxu1 %v3602_v27 }
 0x11b   : > { %v1093_v55 = vmax.f32 %v1029_v46, 0.0  ;;  %v1095_v56 = vmax.f32 %v1031_v47, 0.0  ;;  %1396 = vmatprep.mubr.f32.mxu0 %v3828_v4  ;;  %1485 = vmatprep.mubr.f32.mxu1 %v3828_v4 }
 0x11c   : > { %v1094_v61 = vmax.f32 %v1030_v51, 0.0  ;;  %v1096_v62 = vmax.f32 %v1032_v52, 0.0  ;;  %v861_v63 = vpop.f32.mrb[28].mxu0  ;;  %v974_v9 = vpop.f32.mrb[28].mxu1 }
 0x11d   : > { %v3590_v10 = vpack.c.bf16 %v1093_v55, %v1085_v53  ;;  %v3606_v12 = vpack.c.bf16 %v1095_v56, %v1087_v54  ;;  %v863_v14 = vpop.f32.mrb[29].mxu0  ;;  %v976_v16 = vpop.f32.mrb[29].mxu1  ;;  %v1037_v21 = vadd.f32 %v861_v63, %v463_v57  ;;  %v1039_v22 = vadd.f32 %v974_v9, %v465_v58 }
 0x11e   : > { %v3588_v17 = vpack.c.bf16 %v1094_v61, %v1086_v59  ;;  %v3604_v18 = vpack.c.bf16 %v1096_v62, %v1088_v60  ;;  %v1038_v25 = vadd.f32 %v863_v14, %v464_v13  ;;  %v1040_v26 = vadd.f32 %v976_v16, %v466_v15  ;;  %v4422_v54 = vpop.permute.xlu1 %1133 }
 0x11f   : > { %v1101_v37 = vmax.f32 %v1037_v21, 0.0  ;;  %v1103_v38 = vmax.f32 %v1039_v22, 0.0 }
 0x120   : > { %v867_v27 = vpop.f32.mrb[30].mxu0  ;;  %v980_v29 = vpop.f32.mrb[30].mxu1  ;;  %3589 = vmatprep.subr.bf16.mxu0 %v3588_v17  ;;  %3605 = vmatprep.subr.bf16.mxu1 %v3604_v18  ;;  %v1102_v41 = vmax.f32 %v1038_v25, 0.0  ;;  %v1104_v42 = vmax.f32 %v1040_v26, 0.0 }
 0x121   : > { %v1045_v30 = vadd.f32 %v867_v27, %v471_v19  ;;  %v1047_v31 = vadd.f32 %v980_v29, %v473_v20  ;;  %v869_v32 = vpop.f32.mrb[31].mxu0  ;;  %v982_v34 = vpop.f32.mrb[31].mxu1  ;;  %3591 = vmatpush1.bf16.msra.mxu0 %v3590_v10  ;;  %3607 = vmatpush1.bf16.msra.mxu1 %v3606_v12 }
 0x122   : > { %v1046_v35 = vadd.f32 %v869_v32, %v472_v23  ;;  %v1048_v36 = vadd.f32 %v982_v34, %v474_v24  ;;  %v4430_v27 = vpop.permute.xlu1 %1138 }
 0x123   : > { %v1109_v39 = vmax.f32 %v1045_v30, 0.0  ;;  %v1111_v40 = vmax.f32 %v1047_v31, 0.0 }
 0x124   : > { %v1110_v43 = vmax.f32 %v1046_v35, 0.0  ;;  %v1112_v44 = vmax.f32 %v1048_v36, 0.0 }
 0x125   : > { %v3594_v45 = vpack.c.bf16 %v1109_v39, %v1101_v37  ;;  %v3610_v46 = vpack.c.bf16 %v1111_v40, %v1103_v38 }
 0x126   : > { %v3592_v47 = vpack.c.bf16 %v1110_v43, %v1102_v41  ;;  %v3608_v48 = vpack.c.bf16 %v1112_v44, %v1104_v42 }
 0x128   : > { %3593 = vmatprep.subr.bf16.mxu0 %v3592_v47  ;;  %3609 = vmatprep.subr.bf16.mxu1 %v3608_v48 }
 0x129   : > { %3595 = vmatpush1.bf16.msra.mxu0 %v3594_v45  ;;  %3611 = vmatpush1.bf16.msra.mxu1 %v3610_v46 }
 0x12a   : > { %3451 = vmatprep.subr.msk.mxu0 %vm516_vm0, %v3910_v2  ;;  %3461 = vmatprep.subr.msk.mxu1 %vm516_vm0, %v3914_v3  ;;  %v1552_v2 = vld [vmem:[%s4332_s26 + $0x10] sm:$0xff]  ;;  %v1553_v3 = vld [vmem:[%s4332_s26 + $0x18] sm:$0xff] }
 0x12c   : > { %3443 = vmatmul.mubr.msk.f32.vlgmr.msra.gmra.mrb[40].mxu0 %vm1141_vm2, %v4184_v28  ;;  %3447 = vmatmul.mubr.msk.f32.vlgmr.msra.gmra.mrb[40].mxu1 %vm1141_vm2, %v4184_v28  ;;  %v4416_v28 = vpop.permute.xlu0 %1123 }
 0x12d   : > { %1402 = vmatprep.mubr.f32.mxu0 %v3828_v4  ;;  %1491 = vmatprep.mubr.f32.mxu1 %v3828_v4 }
 0x12e   : > { %3452 = vmatpush1.msk.msra.mxu0 %vm516_vm0, %v3901_v0  ;;  %3462 = vmatpush1.msk.msra.mxu1 %vm516_vm0, %v3906_v1  ;;  %v1550_v0 = vld [vmem:[%s4332_s26] sm:$0xff]  ;;  %v1551_v1 = vld [vmem:[%s4332_s26 + $0x8] sm:$0xff] }
 0x12f   : > { %3471 = vmatprep.subr.msk.mxu0 %vm516_vm0, %v3932_v7  ;;  %3481 = vmatprep.subr.msk.mxu1 %vm516_vm0, %v3936_v8  ;;  %v1556_v7 = vld [vmem:[%s4332_s26 + $0x30] sm:$0xff]  ;;  %v1557_v8 = vld [vmem:[%s4332_s26 + $0x38] sm:$0xff] }
 0x130   : > { %3444 = vmatmul.mubr.msk.f32.gmra.mrb[42].mxu0 %vm1141_vm2, %v4206_v49  ;;  %3448 = vmatmul.mubr.msk.f32.gmra.mrb[42].mxu1 %vm1141_vm2, %v4206_v49  ;;  %v4418_v51 = vpop.permute.xlu0 %1128 }
 0x131   : > { %1408 = vmatprep.mubr.f32.mxu0 %v3828_v4  ;;  %1497 = vmatprep.mubr.f32.mxu1 %v3828_v4 }
 0x134   : > { %3445 = vmatmul.mubr.msk.f32.gmra.mrb[44].mxu0 %vm1141_vm2, %v4228_v11  ;;  %3449 = vmatmul.mubr.msk.f32.gmra.mrb[44].mxu1 %vm1141_vm2, %v4228_v11 }
 0x135   : > { %1414 = vmatprep.mubr.f32.mxu0 %v3828_v4  ;;  %1503 = vmatprep.mubr.f32.mxu1 %v3828_v4 }
 0x138   : > { %3446 = vmatmul.mubr.msk.f32.gmra.mrb[46].mxu0 %vm1141_vm2, %v4252_v33  ;;  %3450 = vmatmul.mubr.msk.f32.gmra.mrb[46].mxu1 %vm1141_vm2, %v4252_v33 }
 0x139   : > { %1646 = vmatprep.mubr.f32.mxu0 %v3828_v4  ;;  %1759 = vmatprep.mubr.f32.mxu1 %v3828_v4 }
 0x13c   : > { %3453 = vmatmul.mubr.msk.f32.vlgmr.msra.gmra.mrb[48].mxu0 %vm491_vm1, %v1550_v0  ;;  %3463 = vmatmul.mubr.msk.f32.vlgmr.msra.gmra.mrb[48].mxu1 %vm491_vm1, %v1550_v0 }
 0x13d   : > { %1652 = vmatprep.mubr.f32.mxu0 %v3828_v4  ;;  %1765 = vmatprep.mubr.f32.mxu1 %v3828_v4 }
 0x13e   : > { %3472 = vmatpush1.msk.msra.mxu0 %vm516_vm0, %v3921_v5  ;;  %3482 = vmatpush1.msk.msra.mxu1 %vm516_vm0, %v3926_v6  ;;  %v1554_v5 = vld [vmem:[%s4332_s26 + $0x20] sm:$0xff]  ;;  %v1555_v6 = vld [vmem:[%s4332_s26 + $0x28] sm:$0xff] }
 0x140   : > { %3454 = vmatmul.mubr.msk.f32.gmra.mrb[50].mxu0 %vm491_vm1, %v1551_v1  ;;  %3464 = vmatmul.mubr.msk.f32.gmra.mrb[50].mxu1 %vm491_vm1, %v1551_v1 }
 0x141   : > { %1658 = vmatprep.mubr.f32.mxu0 %v3828_v4  ;;  %1771 = vmatprep.mubr.f32.mxu1 %v3828_v4 }
 0x144   : > { %3455 = vmatmul.mubr.msk.f32.gmra.mrb[52].mxu0 %vm491_vm1, %v1552_v2  ;;  %3465 = vmatmul.mubr.msk.f32.gmra.mrb[52].mxu1 %vm491_vm1, %v1552_v2 }
 0x145   : > { %1664 = vmatprep.mubr.f32.mxu0 %v3828_v4  ;;  %1777 = vmatprep.mubr.f32.mxu1 %v3828_v4 }
 0x148   : > { %3456 = vmatmul.mubr.msk.f32.gmra.mrb[54].mxu0 %vm491_vm1, %v1553_v3  ;;  %3466 = vmatmul.mubr.msk.f32.gmra.mrb[54].mxu1 %vm491_vm1, %v1553_v3 }
 0x149   : > { %1670 = vmatprep.mubr.f32.mxu0 %v3828_v4  ;;  %1783 = vmatprep.mubr.f32.mxu1 %v3828_v4 }
 0x14c   : > { %3457 = vmatmul.mubr.msk.f32.gmra.mrb[56].mxu0 %vm491_vm1, %v1554_v5  ;;  %3467 = vmatmul.mubr.msk.f32.gmra.mrb[56].mxu1 %vm491_vm1, %v1554_v5 }
 0x14d   : > { %1676 = vmatprep.mubr.f32.mxu0 %v3828_v4  ;;  %1789 = vmatprep.mubr.f32.mxu1 %v3828_v4 }
 0x150   : > { %3458 = vmatmul.mubr.msk.f32.gmra.mrb[58].mxu0 %vm491_vm1, %v1555_v6  ;;  %3468 = vmatmul.mubr.msk.f32.gmra.mrb[58].mxu1 %vm491_vm1, %v1555_v6 }
 0x151   : > { %1682 = vmatprep.mubr.f32.mxu0 %v3828_v4  ;;  %1795 = vmatprep.mubr.f32.mxu1 %v3828_v4 }
 0x154   : > { %3459 = vmatmul.mubr.msk.f32.gmra.mrb[60].mxu0 %vm491_vm1, %v1556_v7  ;;  %3469 = vmatmul.mubr.msk.f32.gmra.mrb[60].mxu1 %vm491_vm1, %v1556_v7 }
 0x155   : > { %1688 = vmatprep.mubr.f32.mxu0 %v3828_v4  ;;  %1801 = vmatprep.mubr.f32.mxu1 %v3828_v4 }
 0x158   : > { %3460 = vmatmul.mubr.msk.f32.gmra.mrb[62].mxu0 %vm491_vm1, %v1557_v8  ;;  %3470 = vmatmul.mubr.msk.f32.gmra.mrb[62].mxu1 %vm491_vm1, %v1557_v8 }
 0x159   : > { %1872 = vmatprep.mubr.f32.mxu0 %v3828_v4  ;;  %1985 = vmatprep.mubr.f32.mxu1 %v3828_v4 }
 0x15c   : > { %3473 = vmatmul.mubr.msk.f32.vlgmr.msra.gmra.mrb[64].mxu0 %vm491_vm1, %v1550_v0  ;;  %3483 = vmatmul.mubr.msk.f32.vlgmr.msra.gmra.mrb[64].mxu1 %vm491_vm1, %v1550_v0 }
 0x15d   : > { %1878 = vmatprep.mubr.f32.mxu0 %v3828_v4  ;;  %1991 = vmatprep.mubr.f32.mxu1 %v3828_v4 }
 0x160   : > { %3474 = vmatmul.mubr.msk.f32.gmra.mrb[66].mxu0 %vm491_vm1, %v1551_v1  ;;  %3484 = vmatmul.mubr.msk.f32.gmra.mrb[66].mxu1 %vm491_vm1, %v1551_v1 }
 0x161   : > { %1884 = vmatprep.mubr.f32.mxu0 %v3828_v4  ;;  %1997 = vmatprep.mubr.f32.mxu1 %v3828_v4 }
 0x164   : > { %3475 = vmatmul.mubr.msk.f32.gmra.mrb[68].mxu0 %vm491_vm1, %v1552_v2  ;;  %3485 = vmatmul.mubr.msk.f32.gmra.mrb[68].mxu1 %vm491_vm1, %v1552_v2 }
 0x165   : > { %1890 = vmatprep.mubr.f32.mxu0 %v3828_v4  ;;  %2003 = vmatprep.mubr.f32.mxu1 %v3828_v4 }
 0x168   : > { %3476 = vmatmul.mubr.msk.f32.gmra.mrb[70].mxu0 %vm491_vm1, %v1553_v3  ;;  %3486 = vmatmul.mubr.msk.f32.gmra.mrb[70].mxu1 %vm491_vm1, %v1553_v3 }
 0x169   : > { %1896 = vmatprep.mubr.f32.mxu0 %v3828_v4  ;;  %2009 = vmatprep.mubr.f32.mxu1 %v3828_v4 }
 0x16c   : > { %3477 = vmatmul.mubr.msk.f32.gmra.mrb[72].mxu0 %vm491_vm1, %v1554_v5  ;;  %3487 = vmatmul.mubr.msk.f32.gmra.mrb[72].mxu1 %vm491_vm1, %v1554_v5 }
 0x16d   : > { %1902 = vmatprep.mubr.f32.mxu0 %v3828_v4  ;;  %2015 = vmatprep.mubr.f32.mxu1 %v3828_v4 }
 0x170   : > { %3478 = vmatmul.mubr.msk.f32.gmra.mrb[74].mxu0 %vm491_vm1, %v1555_v6  ;;  %3488 = vmatmul.mubr.msk.f32.gmra.mrb[74].mxu1 %vm491_vm1, %v1555_v6  ;;  %v4443_v6 = vld [vmem:[%s4716_s6] sm:$0xff] }
 0x171   : > { %1908 = vmatprep.mubr.f32.mxu0 %v3828_v4  ;;  %2021 = vmatprep.mubr.f32.mxu1 %v3828_v4 }
 0x174   : > { %3479 = vmatmul.mubr.msk.f32.gmra.mrb[76].mxu0 %vm491_vm1, %v1556_v7  ;;  %3489 = vmatmul.mubr.msk.f32.gmra.mrb[76].mxu1 %vm491_vm1, %v1556_v7  ;;  %v4454_v7 = vld [vmem:[%s4716_s6 + $0x8] sm:$0xff] }
 0x175   : > { %1914 = vmatprep.mubr.f32.mxu0 %v3828_v4  ;;  %2027 = vmatprep.mubr.f32.mxu1 %v3828_v4 }
 0x178   : > { %3480 = vmatmul.mubr.msk.f32.gmra.mrb[78].mxu0 %vm491_vm1, %v1557_v8  ;;  %3490 = vmatmul.mubr.msk.f32.gmra.mrb[78].mxu1 %vm491_vm1, %v1557_v8  ;;  %v4465_v8 = vld [vmem:[%s4716_s6 + $0x10] sm:$0xff] }
 0x179   : > { %2123 = vmatprep.mubr.f32.mxu0 %v3828_v4  ;;  %2236 = vmatprep.mubr.f32.mxu1 %v3828_v4 }
 0x1df   : > { %v1220_v49 = vpop.f32.mrb[32].mxu0  ;;  %v1309_v11 = vpop.f32.mrb[32].mxu1 }
 0x1e0   : > { %v1222_v33 = vpop.f32.mrb[33].mxu0  ;;  %v1311_v50 = vpop.f32.mrb[33].mxu1  ;;  %v1221_v52 = vadd.f32 %v1220_v49, %v4416_v28  ;;  %v1310_v53 = vadd.f32 %v1309_v11, %v4416_v28 }
 0x1e1   : > { %v1223_v55 = vadd.f32 %v1222_v33, %v4416_v28  ;;  %v1312_v56 = vadd.f32 %v1311_v50, %v4416_v28 }
 0x1e2   : > { %v1510_v10 = vmax.f32 %v1221_v52, 0.0  ;;  %v1512_v12 = vmax.f32 %v1310_v53, 0.0  ;;  %v4476_v52 = vld [vmem:[%s4716_s6 + $0x18] sm:$0xff] }
 0x1e3   : > { %v1226_v57 = vpop.f32.mrb[34].mxu0  ;;  %v1315_v58 = vpop.f32.mrb[34].mxu1  ;;  %v1511_v15 = vmax.f32 %v1223_v55, 0.0  ;;  %v1513_v16 = vmax.f32 %v1312_v56, 0.0 }
 0x1e4   : > { %v1227_v59 = vadd.f32 %v1226_v57, %v4418_v51  ;;  %v1316_v60 = vadd.f32 %v1315_v58, %v4418_v51  ;;  %v1228_v61 = vpop.f32.mrb[35].mxu0  ;;  %v1317_v62 = vpop.f32.mrb[35].mxu1 }
 0x1e5   : > { %v1229_v63 = vadd.f32 %v1228_v61, %v4418_v51  ;;  %v1318_v9 = vadd.f32 %v1317_v62, %v4418_v51 }
 0x1e6   : > { %v1518_v13 = vmax.f32 %v1227_v59, 0.0  ;;  %v1520_v14 = vmax.f32 %v1316_v60, 0.0 }
 0x1e7   : > { %v1519_v17 = vmax.f32 %v1229_v63, 0.0  ;;  %v1521_v18 = vmax.f32 %v1318_v9, 0.0  ;;  %v1232_v19 = vpop.f32.mrb[36].mxu0  ;;  %v1321_v20 = vpop.f32.mrb[36].mxu1 }
 0x1e8   : > { %v3614_v21 = vpack.c.bf16 %v1518_v13, %v1510_v10  ;;  %v3622_v22 = vpack.c.bf16 %v1520_v14, %v1512_v12  ;;  %v1234_v23 = vpop.f32.mrb[37].mxu0  ;;  %v1323_v24 = vpop.f32.mrb[37].mxu1  ;;  %v1233_v29 = vadd.f32 %v1232_v19, %v4422_v54  ;;  %v1322_v30 = vadd.f32 %v1321_v20, %v4422_v54 }
 0x1e9   : > { %v3612_v25 = vpack.c.bf16 %v1519_v17, %v1511_v15  ;;  %v3620_v26 = vpack.c.bf16 %v1521_v18, %v1513_v16  ;;  %v1235_v31 = vadd.f32 %v1234_v23, %v4422_v54  ;;  %v1324_v32 = vadd.f32 %v1323_v24, %v4422_v54 }
 0x1ea   : > { %v1526_v42 = vmax.f32 %v1233_v29, 0.0  ;;  %v1528_v43 = vmax.f32 %v1322_v30, 0.0 }
 0x1eb   : > { %v1238_v34 = vpop.f32.mrb[38].mxu0  ;;  %v1327_v35 = vpop.f32.mrb[38].mxu1  ;;  %3613 = vmatprep.subr.bf16.mxu0 %v3612_v25  ;;  %3621 = vmatprep.subr.bf16.mxu1 %v3620_v26  ;;  %v1527_v46 = vmax.f32 %v1235_v31, 0.0  ;;  %v1529_v47 = vmax.f32 %v1324_v32, 0.0  ;;  %v4505_v25 = vld [vmem:[%s4716_s6 + $0x28] sm:$0xff] }
 0x1ec   : > { %v1239_v36 = vadd.f32 %v1238_v34, %v4430_v27  ;;  %v1328_v37 = vadd.f32 %v1327_v35, %v4430_v27  ;;  %v1240_v38 = vpop.f32.mrb[39].mxu0  ;;  %v1329_v39 = vpop.f32.mrb[39].mxu1  ;;  %3615 = vmatpush1.bf16.msra.mxu0 %v3614_v21  ;;  %3623 = vmatpush1.bf16.msra.mxu1 %v3622_v22 }
 0x1ed   : > { %v1241_v40 = vadd.f32 %v1240_v38, %v4430_v27  ;;  %v1330_v41 = vadd.f32 %v1329_v39, %v4430_v27 }
 0x1ee   : > { %v1534_v44 = vmax.f32 %v1239_v36, 0.0  ;;  %v1536_v45 = vmax.f32 %v1328_v37, 0.0 }
 0x1ef   : > { %v1535_v48 = vmax.f32 %v1241_v40, 0.0  ;;  %v1537_v0 = vmax.f32 %v1330_v41, 0.0 }
 0x1f0   : > { %v3618_v1 = vpack.c.bf16 %v1534_v44, %v1526_v42  ;;  %v3626_v2 = vpack.c.bf16 %v1536_v45, %v1528_v43 }
 0x1f1   : > { %v3616_v3 = vpack.c.bf16 %v1535_v48, %v1527_v46  ;;  %v3624_v5 = vpack.c.bf16 %v1537_v0, %v1529_v47 }
 0x1f3   : > { %3617 = vmatprep.subr.bf16.mxu0 %v3616_v3  ;;  %3625 = vmatprep.subr.bf16.mxu1 %v3624_v5  ;;  %v1549_v3 = vld [vmem:[%s4716_s6 + $0x38] sm:$0xff] }
 0x1f4   : > { %3619 = vmatpush1.bf16.msra.mxu0 %v3618_v1  ;;  %3627 = vmatpush1.bf16.msra.mxu1 %v3626_v2 }
 0x1f7   : > { %3491 = vmatmul.mubr.msk.f32.vlgmr.msra.gmra.mrb[48].mxu0 %vm2034_vm3, %v4443_v6  ;;  %3499 = vmatmul.mubr.msk.f32.vlgmr.msra.gmra.mrb[48].mxu1 %vm2034_vm3, %v4443_v6 }
 0x1f8   : > { %2129 = vmatprep.mubr.f32.mxu0 %v3828_v4  ;;  %2242 = vmatprep.mubr.f32.mxu1 %v3828_v4 }
 0x1fb   : > { %3492 = vmatmul.mubr.msk.f32.gmra.mrb[50].mxu0 %vm2034_vm3, %v4454_v7  ;;  %3500 = vmatmul.mubr.msk.f32.gmra.mrb[50].mxu1 %vm2034_vm3, %v4454_v7 }
 0x1fc   : > { %2135 = vmatprep.mubr.f32.mxu0 %v3828_v4  ;;  %2248 = vmatprep.mubr.f32.mxu1 %v3828_v4 }
 0x1ff   : > { %v1398_v49 = vpop.f32.mrb[40].mxu0  ;;  %v1487_v11 = vpop.f32.mrb[40].mxu1  ;;  %3493 = vmatmul.mubr.msk.f32.gmra.mrb[52].mxu0 %vm2034_vm3, %v4465_v8  ;;  %3501 = vmatmul.mubr.msk.f32.gmra.mrb[52].mxu1 %vm2034_vm3, %v4465_v8 }
 0x200   : > { %v1400_v33 = vpop.f32.mrb[41].mxu0  ;;  %v1489_v50 = vpop.f32.mrb[41].mxu1  ;;  %2141 = vmatprep.mubr.f32.mxu0 %v3828_v4  ;;  %2254 = vmatprep.mubr.f32.mxu1 %v3828_v4  ;;  %v1399_v53 = vadd.f32 %v1398_v49, %v4416_v28  ;;  %v1488_v55 = vadd.f32 %v1487_v11, %v4416_v28 }
 0x201   : > { %v1401_v56 = vadd.f32 %v1400_v33, %v4416_v28  ;;  %v1490_v57 = vadd.f32 %v1489_v50, %v4416_v28  ;;  %v4493_v28 = vld [vmem:[%s4716_s6 + $0x20] sm:$0xff] }
 0x202   : > { %v1514_v12 = vmax.f32 %v1399_v53, 0.0  ;;  %v1516_v13 = vmax.f32 %v1488_v55, 0.0 }
 0x203   : > { %v1404_v58 = vpop.f32.mrb[42].mxu0  ;;  %v1493_v59 = vpop.f32.mrb[42].mxu1  ;;  %3494 = vmatmul.mubr.msk.f32.gmra.mrb[54].mxu0 %vm2034_vm3, %v4476_v52  ;;  %3502 = vmatmul.mubr.msk.f32.gmra.mrb[54].mxu1 %vm2034_vm3, %v4476_v52  ;;  %v1515_v16 = vmax.f32 %v1401_v56, 0.0  ;;  %v1517_v17 = vmax.f32 %v1490_v57, 0.0 }
 0x204   : > { %v1405_v60 = vadd.f32 %v1404_v58, %v4418_v51  ;;  %v1494_v61 = vadd.f32 %v1493_v59, %v4418_v51  ;;  %v1406_v62 = vpop.f32.mrb[43].mxu0  ;;  %v1495_v63 = vpop.f32.mrb[43].mxu1  ;;  %2147 = vmatprep.mubr.f32.mxu0 %v3828_v4  ;;  %2260 = vmatprep.mubr.f32.mxu1 %v3828_v4 }
 0x205   : > { %v1407_v9 = vadd.f32 %v1406_v62, %v4418_v51  ;;  %v1496_v10 = vadd.f32 %v1495_v63, %v4418_v51 }
 0x206   : > { %v1522_v14 = vmax.f32 %v1405_v60, 0.0  ;;  %v1524_v15 = vmax.f32 %v1494_v61, 0.0 }
 0x207   : > { %v1523_v18 = vmax.f32 %v1407_v9, 0.0  ;;  %v1525_v19 = vmax.f32 %v1496_v10, 0.0  ;;  %v1410_v20 = vpop.f32.mrb[44].mxu0  ;;  %v1499_v21 = vpop.f32.mrb[44].mxu1  ;;  %3495 = vmatmul.mubr.msk.f32.gmra.mrb[56].mxu0 %vm2034_vm3, %v4493_v28  ;;  %3503 = vmatmul.mubr.msk.f32.gmra.mrb[56].mxu1 %vm2034_vm3, %v4493_v28 }
 0x208   : > { %v3630_v22 = vpack.c.bf16 %v1522_v14, %v1514_v12  ;;  %v3638_v23 = vpack.c.bf16 %v1524_v15, %v1516_v13  ;;  %v1412_v24 = vpop.f32.mrb[45].mxu0  ;;  %v1501_v51 = vpop.f32.mrb[45].mxu1  ;;  %2153 = vmatprep.mubr.f32.mxu0 %v3828_v4  ;;  %2266 = vmatprep.mubr.f32.mxu1 %v3828_v4  ;;  %v1411_v30 = vadd.f32 %v1410_v20, %v4422_v54 }
 0x209   : > { %v3628_v26 = vpack.c.bf16 %v1523_v18, %v1515_v16  ;;  %v3636_v29 = vpack.c.bf16 %v1525_v19, %v1517_v17  ;;  %v1500_v31 = vadd.f32 %v1499_v21, %v4422_v54  ;;  %v1413_v32 = vadd.f32 %v1412_v24, %v4422_v54 }
 0x20a   : > { %v1502_v34 = vadd.f32 %v1501_v51, %v4422_v54  ;;  %v1548_v54 = vld [vmem:[%s4716_s6 + $0x30] sm:$0xff]  ;;  %v1530_v43 = vmax.f32 %v1411_v30, 0.0 }
 0x20b   : > { %v1416_v35 = vpop.f32.mrb[46].mxu0  ;;  %v1505_v36 = vpop.f32.mrb[46].mxu1  ;;  %3496 = vmatmul.mubr.msk.f32.gmra.mrb[58].mxu0 %vm2034_vm3, %v4505_v25  ;;  %3504 = vmatmul.mubr.msk.f32.gmra.mrb[58].mxu1 %vm2034_vm3, %v4505_v25  ;;  %v1532_v44 = vmax.f32 %v1500_v31, 0.0  ;;  %v1531_v47 = vmax.f32 %v1413_v32, 0.0 }
 0x20c   : > { %v1417_v37 = vadd.f32 %v1416_v35, %v4430_v27  ;;  %v1506_v38 = vadd.f32 %v1505_v36, %v4430_v27  ;;  %3629 = vmatprep.subr.bf16.mxu0 %v3628_v26  ;;  %3637 = vmatprep.subr.bf16.mxu1 %v3636_v29  ;;  %v1418_v39 = vpop.f32.mrb[47].mxu0  ;;  %v1507_v40 = vpop.f32.mrb[47].mxu1  ;;  %v1533_v48 = vmax.f32 %v1502_v34, 0.0 }
 0x20d   : > { %v1419_v41 = vadd.f32 %v1418_v39, %v4430_v27  ;;  %v1508_v42 = vadd.f32 %v1507_v40, %v4430_v27  ;;  %3631 = vmatpush1.bf16.msra.mxu0 %v3630_v22  ;;  %3639 = vmatpush1.bf16.msra.mxu1 %v3638_v23 }
 0x20e   : > { %v1538_v45 = vmax.f32 %v1417_v37, 0.0  ;;  %v1540_v46 = vmax.f32 %v1506_v38, 0.0  ;;  %2159 = vmatprep.mubr.f32.mxu0 %v3828_v4  ;;  %2272 = vmatprep.mubr.f32.mxu1 %v3828_v4 }
 0x20f   : > { %v1539_v0 = vmax.f32 %v1419_v41, 0.0  ;;  %v1541_v1 = vmax.f32 %v1508_v42, 0.0  ;;  %3497 = vmatmul.mubr.msk.f32.gmra.mrb[60].mxu0 %vm2034_vm3, %v1548_v54  ;;  %3505 = vmatmul.mubr.msk.f32.gmra.mrb[60].mxu1 %vm2034_vm3, %v1548_v54 }
 0x210   : > { %v3634_v2 = vpack.c.bf16 %v1538_v45, %v1530_v43  ;;  %v3642_v27 = vpack.c.bf16 %v1540_v46, %v1532_v44  ;;  %2165 = vmatprep.mubr.f32.mxu0 %v3828_v4  ;;  %2278 = vmatprep.mubr.f32.mxu1 %v3828_v4 }
 0x211   : > { %v3632_v5 = vpack.c.bf16 %v1539_v0, %v1531_v47  ;;  %v3640_v49 = vpack.c.bf16 %v1541_v1, %v1533_v48 }
 0x213   : > { %3498 = vmatmul.mubr.msk.f32.gmra.mrb[62].mxu0 %vm2034_vm3, %v1549_v3  ;;  %3506 = vmatmul.mubr.msk.f32.gmra.mrb[62].mxu1 %vm2034_vm3, %v1549_v3 }
 0x214   : > { %3633 = vmatprep.subr.bf16.mxu0 %v3632_v5  ;;  %3641 = vmatprep.subr.bf16.mxu1 %v3640_v49 }
 0x215   : > { %3635 = vmatpush1.bf16.msra.mxu0 %v3634_v2  ;;  %3643 = vmatpush1.bf16.msra.mxu1 %v3642_v27 }
 0x216   : > { %2349 = vmatprep.mubr.f32.mxu0 %v3828_v4  ;;  %2462 = vmatprep.mubr.f32.mxu1 %v3828_v4 }
 0x218   : > { %3507 = vmatmul.mubr.msk.f32.vlgmr.msra.gmra.mrb[64].mxu0 %vm2034_vm3, %v4443_v6  ;;  %3515 = vmatmul.mubr.msk.f32.vlgmr.msra.gmra.mrb[64].mxu1 %vm2034_vm3, %v4443_v6 }
 0x219   : > { %2355 = vmatprep.mubr.f32.mxu0 %v3828_v4  ;;  %2468 = vmatprep.mubr.f32.mxu1 %v3828_v4 }
 0x21c   : > { %3508 = vmatmul.mubr.msk.f32.gmra.mrb[66].mxu0 %vm2034_vm3, %v4454_v7  ;;  %3516 = vmatmul.mubr.msk.f32.gmra.mrb[66].mxu1 %vm2034_vm3, %v4454_v7 }
 0x21d   : > { %2361 = vmatprep.mubr.f32.mxu0 %v3828_v4  ;;  %2474 = vmatprep.mubr.f32.mxu1 %v3828_v4 }
 0x220   : > { %3509 = vmatmul.mubr.msk.f32.gmra.mrb[68].mxu0 %vm2034_vm3, %v4465_v8  ;;  %3517 = vmatmul.mubr.msk.f32.gmra.mrb[68].mxu1 %vm2034_vm3, %v4465_v8 }
 0x221   : > { %2367 = vmatprep.mubr.f32.mxu0 %v3828_v4  ;;  %2480 = vmatprep.mubr.f32.mxu1 %v3828_v4 }
 0x224   : > { %3510 = vmatmul.mubr.msk.f32.gmra.mrb[70].mxu0 %vm2034_vm3, %v4476_v52  ;;  %3518 = vmatmul.mubr.msk.f32.gmra.mrb[70].mxu1 %vm2034_vm3, %v4476_v52 }
 0x225   : > { %2373 = vmatprep.mubr.f32.mxu0 %v3828_v4  ;;  %2486 = vmatprep.mubr.f32.mxu1 %v3828_v4 }
 0x228   : > { %3511 = vmatmul.mubr.msk.f32.gmra.mrb[72].mxu0 %vm2034_vm3, %v4493_v28  ;;  %3519 = vmatmul.mubr.msk.f32.gmra.mrb[72].mxu1 %vm2034_vm3, %v4493_v28 }
 0x229   : > { %2379 = vmatprep.mubr.f32.mxu0 %v3828_v4  ;;  %2492 = vmatprep.mubr.f32.mxu1 %v3828_v4 }
 0x22c   : > { %3512 = vmatmul.mubr.msk.f32.gmra.mrb[74].mxu0 %vm2034_vm3, %v4505_v25  ;;  %3520 = vmatmul.mubr.msk.f32.gmra.mrb[74].mxu1 %vm2034_vm3, %v4505_v25 }
 0x22d   : > { %2385 = vmatprep.mubr.f32.mxu0 %v3828_v4  ;;  %2498 = vmatprep.mubr.f32.mxu1 %v3828_v4 }
 0x230   : > { %3513 = vmatmul.mubr.msk.f32.gmra.mrb[76].mxu0 %vm2034_vm3, %v1548_v54  ;;  %3521 = vmatmul.mubr.msk.f32.gmra.mrb[76].mxu1 %vm2034_vm3, %v1548_v54 }
 0x231   : > { %2391 = vmatprep.mubr.f32.mxu0 %v3828_v4  ;;  %2504 = vmatprep.mubr.f32.mxu1 %v3828_v4 }
 0x234   : > { %3514 = vmatmul.mubr.msk.f32.gmra.mrb[78].mxu0 %vm2034_vm3, %v1549_v3  ;;  %3522 = vmatmul.mubr.msk.f32.gmra.mrb[78].mxu1 %vm2034_vm3, %v1549_v3 }
 0x235   : > { %2679 = vmatprep.mubr.f32.mxu0 %v3828_v4  ;;  %2768 = vmatprep.mubr.f32.mxu1 %v3828_v4 }
 0x2ca   : > { %v2125_v6 = vpop.f32.mrb[48].mxu0  ;;  %v2238_v7 = vpop.f32.mrb[48].mxu1 }
 0x2cb   : > { %v2127_v8 = vpop.f32.mrb[49].mxu0  ;;  %v2240_v11 = vpop.f32.mrb[49].mxu1  ;;  %v2511_v52 = vmax.f32 %v2125_v6, 0.0  ;;  %v2513_v53 = vmax.f32 %v2238_v7, 0.0 }
 0x2cc   : > { %v2512_v59 = vmax.f32 %v2127_v8, 0.0  ;;  %v2514_v60 = vmax.f32 %v2240_v11, 0.0 }
 0x2ce   : > { %v2131_v33 = vpop.f32.mrb[50].mxu0  ;;  %v2244_v50 = vpop.f32.mrb[50].mxu1 }
 0x2cf   : > { %v2519_v55 = vmax.f32 %v2131_v33, 0.0  ;;  %v2521_v56 = vmax.f32 %v2244_v50, 0.0  ;;  %v2133_v57 = vpop.f32.mrb[51].mxu0  ;;  %v2246_v58 = vpop.f32.mrb[51].mxu1 }
 0x2d0   : > { %v2520_v61 = vmax.f32 %v2133_v57, 0.0  ;;  %v2522_v62 = vmax.f32 %v2246_v58, 0.0 }
 0x2d1   : > { %v3646_v63 = vpack.c.bf16 %v2519_v55, %v2511_v52  ;;  %v3662_v28 = vpack.c.bf16 %v2521_v56, %v2513_v53 }
 0x2d2   : > { %v3644_v9 = vpack.c.bf16 %v2520_v61, %v2512_v59  ;;  %v3660_v10 = vpack.c.bf16 %v2522_v62, %v2514_v60  ;;  %v2137_v12 = vpop.f32.mrb[52].mxu0  ;;  %v2250_v13 = vpop.f32.mrb[52].mxu1 }
 0x2d3   : > { %v2139_v14 = vpop.f32.mrb[53].mxu0  ;;  %v2252_v15 = vpop.f32.mrb[53].mxu1  ;;  %v2527_v18 = vmax.f32 %v2137_v12, 0.0  ;;  %v2529_v19 = vmax.f32 %v2250_v13, 0.0  ;;  %v4583_v13 = vld [vmem:[%s4717_s7] sm:$0xff] }
 0x2d4   : > { %3645 = vmatprep.subr.bf16.mxu0 %v3644_v9  ;;  %3661 = vmatprep.subr.bf16.mxu1 %v3660_v10  ;;  %v2528_v24 = vmax.f32 %v2139_v14, 0.0  ;;  %v2530_v51 = vmax.f32 %v2252_v15, 0.0 }
 0x2d5   : > { %3647 = vmatpush1.bf16.msra.mxu0 %v3646_v63  ;;  %3663 = vmatpush1.bf16.msra.mxu1 %v3662_v28 }
 0x2d6   : > { %v2143_v16 = vpop.f32.mrb[54].mxu0  ;;  %v2256_v17 = vpop.f32.mrb[54].mxu1 }
 0x2d7   : > { %v2535_v20 = vmax.f32 %v2143_v16, 0.0  ;;  %v2537_v21 = vmax.f32 %v2256_v17, 0.0  ;;  %v2145_v22 = vpop.f32.mrb[55].mxu0  ;;  %v2258_v23 = vpop.f32.mrb[55].mxu1 }
 0x2d8   : > { %v2536_v25 = vmax.f32 %v2145_v22, 0.0  ;;  %v2538_v26 = vmax.f32 %v2258_v23, 0.0 }
 0x2d9   : > { %v3650_v29 = vpack.c.bf16 %v2535_v20, %v2527_v18  ;;  %v3666_v30 = vpack.c.bf16 %v2537_v21, %v2529_v19 }
 0x2da   : > { %v3648_v31 = vpack.c.bf16 %v2536_v25, %v2528_v24  ;;  %v3664_v32 = vpack.c.bf16 %v2538_v26, %v2530_v51  ;;  %v2149_v34 = vpop.f32.mrb[56].mxu0  ;;  %v2262_v35 = vpop.f32.mrb[56].mxu1  ;;  %v4594_v25 = vld [vmem:[%s4717_s7 + $0x8] sm:$0xff] }
 0x2db   : > { %v2151_v36 = vpop.f32.mrb[57].mxu0  ;;  %v2264_v37 = vpop.f32.mrb[57].mxu1  ;;  %v2543_v40 = vmax.f32 %v2149_v34, 0.0  ;;  %v2545_v54 = vmax.f32 %v2262_v35, 0.0 }
 0x2dc   : > { %3649 = vmatprep.subr.bf16.mxu0 %v3648_v31  ;;  %3665 = vmatprep.subr.bf16.mxu1 %v3664_v32  ;;  %v2544_v45 = vmax.f32 %v2151_v36, 0.0  ;;  %v2546_v46 = vmax.f32 %v2264_v37, 0.0  ;;  %v4603_v37 = vld [vmem:[%s4717_s7 + $0x10] sm:$0xff] }
 0x2dd   : > { %3651 = vmatpush1.bf16.msra.mxu0 %v3650_v29  ;;  %3667 = vmatpush1.bf16.msra.mxu1 %v3666_v30 }
 0x2de   : > { %v2155_v38 = vpop.f32.mrb[58].mxu0  ;;  %v2268_v39 = vpop.f32.mrb[58].mxu1 }
 0x2df   : > { %v2551_v41 = vmax.f32 %v2155_v38, 0.0  ;;  %v2553_v42 = vmax.f32 %v2268_v39, 0.0  ;;  %v2157_v43 = vpop.f32.mrb[59].mxu0  ;;  %v2270_v44 = vpop.f32.mrb[59].mxu1 }
 0x2e0   : > { %v2552_v47 = vmax.f32 %v2157_v43, 0.0  ;;  %v2554_v48 = vmax.f32 %v2270_v44, 0.0 }
 0x2e1   : > { %v3654_v0 = vpack.c.bf16 %v2551_v41, %v2543_v40  ;;  %v3670_v1 = vpack.c.bf16 %v2553_v42, %v2545_v54 }
 0x2e2   : > { %v3652_v2 = vpack.c.bf16 %v2552_v47, %v2544_v45  ;;  %v3668_v27 = vpack.c.bf16 %v2554_v48, %v2546_v46  ;;  %v2161_v3 = vpop.f32.mrb[60].mxu0  ;;  %v2274_v5 = vpop.f32.mrb[60].mxu1 }
 0x2e3   : > { %v2163_v49 = vpop.f32.mrb[61].mxu0  ;;  %v2276_v6 = vpop.f32.mrb[61].mxu1  ;;  %v2559_v11 = vmax.f32 %v2161_v3, 0.0  ;;  %v2561_v33 = vmax.f32 %v2274_v5, 0.0 }
 0x2e4   : > { %3653 = vmatprep.subr.bf16.mxu0 %v3652_v2  ;;  %3669 = vmatprep.subr.bf16.mxu1 %v3668_v27  ;;  %v2560_v56 = vmax.f32 %v2163_v49, 0.0  ;;  %v2562_v57 = vmax.f32 %v2276_v6, 0.0 }
 0x2e5   : > { %3655 = vmatpush1.bf16.msra.mxu0 %v3654_v0  ;;  %3671 = vmatpush1.bf16.msra.mxu1 %v3670_v1  ;;  %v4616_v0 = vld [vmem:[%s4717_s7 + $0x18] sm:$0xff] }
 0x2e6   : > { %v2167_v7 = vpop.f32.mrb[62].mxu0  ;;  %v2280_v8 = vpop.f32.mrb[62].mxu1 }
 0x2e7   : > { %v2567_v50 = vmax.f32 %v2167_v7, 0.0  ;;  %v2569_v52 = vmax.f32 %v2280_v8, 0.0  ;;  %v2169_v53 = vpop.f32.mrb[63].mxu0  ;;  %v2282_v55 = vpop.f32.mrb[63].mxu1 }
 0x2e8   : > { %v2568_v58 = vmax.f32 %v2169_v53, 0.0  ;;  %v2570_v59 = vmax.f32 %v2282_v55, 0.0 }
 0x2e9   : > { %v3658_v60 = vpack.c.bf16 %v2567_v50, %v2559_v11  ;;  %v3674_v61 = vpack.c.bf16 %v2569_v52, %v2561_v33 }
 0x2ea   : > { %v3656_v62 = vpack.c.bf16 %v2568_v58, %v2560_v56  ;;  %v3672_v63 = vpack.c.bf16 %v2570_v59, %v2562_v57 }
 0x2eb   : > { %v2351_v28 = vpop.f32.mrb[64].mxu0  ;;  %v2464_v9 = vpop.f32.mrb[64].mxu1 }
 0x2ec   : > { %v2353_v10 = vpop.f32.mrb[65].mxu0  ;;  %v2466_v12 = vpop.f32.mrb[65].mxu1  ;;  %3657 = vmatprep.subr.bf16.mxu0 %v3656_v62  ;;  %3673 = vmatprep.subr.bf16.mxu1 %v3672_v63  ;;  %v2515_v16 = vmax.f32 %v2351_v28, 0.0  ;;  %v2517_v17 = vmax.f32 %v2464_v9, 0.0 }
 0x2ed   : > { %3659 = vmatpush1.bf16.msra.mxu0 %v3658_v60  ;;  %3675 = vmatpush1.bf16.msra.mxu1 %v3674_v61  ;;  %v2516_v22 = vmax.f32 %v2353_v10, 0.0  ;;  %v2518_v23 = vmax.f32 %v2466_v12, 0.0 }
 0x2ef   : > { %v2357_v14 = vpop.f32.mrb[66].mxu0  ;;  %v2470_v15 = vpop.f32.mrb[66].mxu1 }
 0x2f0   : > { %v2523_v18 = vmax.f32 %v2357_v14, 0.0  ;;  %v2525_v19 = vmax.f32 %v2470_v15, 0.0  ;;  %v2359_v20 = vpop.f32.mrb[67].mxu0  ;;  %v2472_v21 = vpop.f32.mrb[67].mxu1  ;;  %3523 = vmatmul.mubr.msk.f32.vlgmr.msra.gmra.mrb[80].mxu0 %vm1141_vm2, %v4583_v13  ;;  %3527 = vmatmul.mubr.msk.f32.vlgmr.msra.gmra.mrb[80].mxu1 %vm1141_vm2, %v4583_v13 }
 0x2f1   : > { %v2524_v24 = vmax.f32 %v2359_v20, 0.0  ;;  %v2526_v51 = vmax.f32 %v2472_v21, 0.0  ;;  %2685 = vmatprep.mubr.f32.mxu0 %v3828_v4  ;;  %2774 = vmatprep.mubr.f32.mxu1 %v3828_v4 }
 0x2f2   : > { %v3678_v26 = vpack.c.bf16 %v2523_v18, %v2515_v16  ;;  %v3694_v29 = vpack.c.bf16 %v2525_v19, %v2517_v17 }
 0x2f3   : > { %v3676_v30 = vpack.c.bf16 %v2524_v24, %v2516_v22  ;;  %v3692_v31 = vpack.c.bf16 %v2526_v51, %v2518_v23  ;;  %v2363_v32 = vpop.f32.mrb[68].mxu0  ;;  %v2476_v34 = vpop.f32.mrb[68].mxu1 }
 0x2f4   : > { %v2365_v35 = vpop.f32.mrb[69].mxu0  ;;  %v2478_v36 = vpop.f32.mrb[69].mxu1  ;;  %3524 = vmatmul.mubr.msk.f32.gmra.mrb[82].mxu0 %vm1141_vm2, %v4594_v25  ;;  %3528 = vmatmul.mubr.msk.f32.gmra.mrb[82].mxu1 %vm1141_vm2, %v4594_v25  ;;  %v2531_v40 = vmax.f32 %v2363_v32, 0.0  ;;  %v2533_v54 = vmax.f32 %v2476_v34, 0.0 }
 0x2f5   : > { %3677 = vmatprep.subr.bf16.mxu0 %v3676_v30  ;;  %3693 = vmatprep.subr.bf16.mxu1 %v3692_v31  ;;  %v2532_v45 = vmax.f32 %v2365_v35, 0.0  ;;  %v2534_v46 = vmax.f32 %v2478_v36, 0.0  ;;  %v4648_v36 = vpop.permute.xlu0 %2585 }
 0x2f6   : > { %3679 = vmatpush1.bf16.msra.mxu0 %v3678_v26  ;;  %3695 = vmatpush1.bf16.msra.mxu1 %v3694_v29 }
 0x2f7   : > { %v2369_v38 = vpop.f32.mrb[70].mxu0  ;;  %v2482_v39 = vpop.f32.mrb[70].mxu1  ;;  %2691 = vmatprep.mubr.f32.mxu0 %v3828_v4  ;;  %2780 = vmatprep.mubr.f32.mxu1 %v3828_v4 }
 0x2f8   : > { %v2539_v41 = vmax.f32 %v2369_v38, 0.0  ;;  %v2541_v42 = vmax.f32 %v2482_v39, 0.0  ;;  %v2371_v43 = vpop.f32.mrb[71].mxu0  ;;  %v2484_v44 = vpop.f32.mrb[71].mxu1  ;;  %3525 = vmatmul.mubr.msk.f32.gmra.mrb[84].mxu0 %vm1141_vm2, %v4603_v37  ;;  %3529 = vmatmul.mubr.msk.f32.gmra.mrb[84].mxu1 %vm1141_vm2, %v4603_v37 }
 0x2f9   : > { %v2540_v47 = vmax.f32 %v2371_v43, 0.0  ;;  %v2542_v48 = vmax.f32 %v2484_v44, 0.0  ;;  %2697 = vmatprep.mubr.f32.mxu0 %v3828_v4  ;;  %2786 = vmatprep.mubr.f32.mxu1 %v3828_v4 }
 0x2fa   : > { %v3682_v1 = vpack.c.bf16 %v2539_v41, %v2531_v40  ;;  %v3698_v2 = vpack.c.bf16 %v2541_v42, %v2533_v54 }
 0x2fb   : > { %v3680_v27 = vpack.c.bf16 %v2540_v47, %v2532_v45  ;;  %v3696_v3 = vpack.c.bf16 %v2542_v48, %v2534_v46  ;;  %v2375_v5 = vpop.f32.mrb[72].mxu0  ;;  %v2488_v49 = vpop.f32.mrb[72].mxu1 }
 0x2fc   : > { %v2377_v6 = vpop.f32.mrb[73].mxu0  ;;  %v2490_v7 = vpop.f32.mrb[73].mxu1  ;;  %3526 = vmatmul.mubr.msk.f32.gmra.mrb[86].mxu0 %vm1141_vm2, %v4616_v0  ;;  %3530 = vmatmul.mubr.msk.f32.gmra.mrb[86].mxu1 %vm1141_vm2, %v4616_v0  ;;  %v2547_v33 = vmax.f32 %v2375_v5, 0.0  ;;  %v2549_v50 = vmax.f32 %v2488_v49, 0.0 }
 0x2fd   : > { %3681 = vmatprep.subr.bf16.mxu0 %v3680_v27  ;;  %3697 = vmatprep.subr.bf16.mxu1 %v3696_v3  ;;  %v2548_v57 = vmax.f32 %v2377_v6, 0.0  ;;  %v2550_v58 = vmax.f32 %v2490_v7, 0.0 }
 0x2fe   : > { %3683 = vmatpush1.bf16.msra.mxu0 %v3682_v1  ;;  %3699 = vmatpush1.bf16.msra.mxu1 %v3698_v2 }
 0x2ff   : > { %v2381_v8 = vpop.f32.mrb[74].mxu0  ;;  %v2494_v11 = vpop.f32.mrb[74].mxu1  ;;  %2857 = vmatprep.mubr.f32.mxu0 %v3828_v4  ;;  %2946 = vmatprep.mubr.f32.mxu1 %v3828_v4 }
 0x300   : > { %v2555_v52 = vmax.f32 %v2381_v8, 0.0  ;;  %v2557_v53 = vmax.f32 %v2494_v11, 0.0  ;;  %v2383_v55 = vpop.f32.mrb[75].mxu0  ;;  %v2496_v56 = vpop.f32.mrb[75].mxu1 }
 0x301   : > { %v2556_v59 = vmax.f32 %v2383_v55, 0.0  ;;  %v2558_v60 = vmax.f32 %v2496_v56, 0.0 }
 0x302   : > { %v3686_v61 = vpack.c.bf16 %v2555_v52, %v2547_v33  ;;  %v3702_v62 = vpack.c.bf16 %v2557_v53, %v2549_v50  ;;  %v4660_v53 = vpop.permute.xlu0 %2595 }
 0x303   : > { %v3684_v63 = vpack.c.bf16 %v2556_v59, %v2548_v57  ;;  %v3700_v28 = vpack.c.bf16 %v2558_v60, %v2550_v58  ;;  %v2387_v9 = vpop.f32.mrb[76].mxu0  ;;  %v2500_v10 = vpop.f32.mrb[76].mxu1 }
 0x304   : > { %v2389_v12 = vpop.f32.mrb[77].mxu0  ;;  %v2502_v14 = vpop.f32.mrb[77].mxu1  ;;  %v2563_v17 = vmax.f32 %v2387_v9, 0.0  ;;  %v2565_v18 = vmax.f32 %v2500_v10, 0.0 }
 0x305   : > { %3685 = vmatprep.subr.bf16.mxu0 %v3684_v63  ;;  %3701 = vmatprep.subr.bf16.mxu1 %v3700_v28  ;;  %v2564_v23 = vmax.f32 %v2389_v12, 0.0  ;;  %v2566_v24 = vmax.f32 %v2502_v14, 0.0 }
 0x306   : > { %3687 = vmatpush1.bf16.msra.mxu0 %v3686_v61  ;;  %3703 = vmatpush1.bf16.msra.mxu1 %v3702_v62 }
 0x307   : > { %v2393_v15 = vpop.f32.mrb[78].mxu0  ;;  %v2506_v16 = vpop.f32.mrb[78].mxu1 }
 0x308   : > { %v2571_v19 = vmax.f32 %v2393_v15, 0.0  ;;  %v2573_v20 = vmax.f32 %v2506_v16, 0.0  ;;  %v2395_v21 = vpop.f32.mrb[79].mxu0  ;;  %v2508_v22 = vpop.f32.mrb[79].mxu1 }
 0x309   : > { %v2572_v51 = vmax.f32 %v2395_v21, 0.0  ;;  %v2574_v26 = vmax.f32 %v2508_v22, 0.0 }
 0x30a   : > { %v3690_v29 = vpack.c.bf16 %v2571_v19, %v2563_v17  ;;  %v3706_v30 = vpack.c.bf16 %v2573_v20, %v2565_v18 }
 0x30b   : > { %v3688_v31 = vpack.c.bf16 %v2572_v51, %v2564_v23  ;;  %v3704_v32 = vpack.c.bf16 %v2574_v26, %v2566_v24 }
 0x30d   : > { %3689 = vmatprep.subr.bf16.mxu0 %v3688_v31  ;;  %3705 = vmatprep.subr.bf16.mxu1 %v3704_v32 }
 0x30e   : > { %3691 = vmatpush1.bf16.msra.mxu0 %v3690_v29  ;;  %3707 = vmatpush1.bf16.msra.mxu1 %v3706_v30  ;;  %v4675_v30 = vld [vmem:[%s4719_s9] sm:$0x7] }
 0x311   : > { %3531 = vmatmul.mubr.msk.f32.vlgmr.msra.gmra.mrb[88].mxu0 %vm1141_vm2, %v4583_v13  ;;  %3535 = vmatmul.mubr.msk.f32.vlgmr.msra.gmra.mrb[88].mxu1 %vm1141_vm2, %v4583_v13 }
 0x312   : > { %2863 = vmatprep.mubr.f32.mxu0 %v3828_v4  ;;  %2952 = vmatprep.mubr.f32.mxu1 %v3828_v4 }
 0x315   : > { %3532 = vmatmul.mubr.msk.f32.gmra.mrb[90].mxu0 %vm1141_vm2, %v4594_v25  ;;  %3536 = vmatmul.mubr.msk.f32.gmra.mrb[90].mxu1 %vm1141_vm2, %v4594_v25 }
 0x316   : > { %2869 = vmatprep.mubr.f32.mxu0 %v3828_v4  ;;  %2958 = vmatprep.mubr.f32.mxu1 %v3828_v4 }
 0x319   : > { %3533 = vmatmul.mubr.msk.f32.gmra.mrb[92].mxu0 %vm1141_vm2, %v4603_v37  ;;  %3537 = vmatmul.mubr.msk.f32.gmra.mrb[92].mxu1 %vm1141_vm2, %v4603_v37  ;;  %v4650_v37 = vpop.permute.xlu1 %2590 }
 0x31a   : > { %2875 = vmatprep.mubr.f32.mxu0 %v3828_v4  ;;  %2964 = vmatprep.mubr.f32.mxu1 %v3828_v4 }
 0x31d   : > { %3534 = vmatmul.mubr.msk.f32.gmra.mrb[94].mxu0 %vm1141_vm2, %v4616_v0  ;;  %3538 = vmatmul.mubr.msk.f32.gmra.mrb[94].mxu1 %vm1141_vm2, %v4616_v0  ;;  %v4662_v57 = vpop.permute.xlu1 %2600 }
 0x31e   : > { %3077 = vmatprep.mubr.f32.mxu0 %v3828_v4  ;;  %3148 = vmatprep.mubr.f32.mxu1 %v3828_v4 }
 0x3c3   : > { %v2681_v13 = vpop.f32.mrb[80].mxu0  ;;  %v2770_v25 = vpop.f32.mrb[80].mxu1 }
 0x3c4   : > { %v2683_v34 = vpop.f32.mrb[81].mxu0  ;;  %v2772_v35 = vpop.f32.mrb[81].mxu1  ;;  %v2682_v38 = vadd.f32 %v2681_v13, %v4648_v36  ;;  %v2771_v39 = vadd.f32 %v2770_v25, %v4648_v36 }
 0x3c5   : > { %v2684_v40 = vadd.f32 %v2683_v34, %v4648_v36  ;;  %v2773_v54 = vadd.f32 %v2772_v35, %v4648_v36 }
 0x3c6   : > { %v2971_v0 = vmax.f32 %v2682_v38, 0.0  ;;  %v2973_v1 = vmax.f32 %v2771_v39, 0.0 }
 0x3c7   : > { %v2687_v41 = vpop.f32.mrb[82].mxu0  ;;  %v2776_v42 = vpop.f32.mrb[82].mxu1  ;;  %v2972_v3 = vmax.f32 %v2684_v40, 0.0  ;;  %v2974_v5 = vmax.f32 %v2773_v54, 0.0 }
 0x3c8   : > { %v2688_v43 = vadd.f32 %v2687_v41, %v4650_v37  ;;  %v2777_v44 = vadd.f32 %v2776_v42, %v4650_v37  ;;  %v2689_v45 = vpop.f32.mrb[83].mxu0  ;;  %v2778_v46 = vpop.f32.mrb[83].mxu1 }
 0x3c9   : > { %v2690_v47 = vadd.f32 %v2689_v45, %v4650_v37  ;;  %v2779_v48 = vadd.f32 %v2778_v46, %v4650_v37 }
 0x3ca   : > { %v2979_v2 = vmax.f32 %v2688_v43, 0.0  ;;  %v2981_v27 = vmax.f32 %v2777_v44, 0.0 }
 0x3cb   : > { %v2980_v49 = vmax.f32 %v2690_v47, 0.0  ;;  %v2982_v6 = vmax.f32 %v2779_v48, 0.0  ;;  %v2693_v7 = vpop.f32.mrb[84].mxu0  ;;  %v2782_v8 = vpop.f32.mrb[84].mxu1 }
 0x3cc   : > { %v3710_v11 = vpack.c.bf16 %v2979_v2, %v2971_v0  ;;  %v3718_v33 = vpack.c.bf16 %v2981_v27, %v2973_v1  ;;  %v2695_v50 = vpop.f32.mrb[85].mxu0  ;;  %v2784_v52 = vpop.f32.mrb[85].mxu1  ;;  %v2694_v58 = vadd.f32 %v2693_v7, %v4660_v53  ;;  %v2783_v59 = vadd.f32 %v2782_v8, %v4660_v53 }
 0x3cd   : > { %v3708_v55 = vpack.c.bf16 %v2980_v49, %v2972_v3  ;;  %v3716_v56 = vpack.c.bf16 %v2982_v6, %v2974_v5  ;;  %v2696_v60 = vadd.f32 %v2695_v50, %v4660_v53  ;;  %v2785_v61 = vadd.f32 %v2784_v52, %v4660_v53 }
 0x3ce   : > { %v2987_v16 = vmax.f32 %v2694_v58, 0.0  ;;  %v2989_v17 = vmax.f32 %v2783_v59, 0.0 }
 0x3cf   : > { %v2699_v62 = vpop.f32.mrb[86].mxu0  ;;  %v2788_v63 = vpop.f32.mrb[86].mxu1  ;;  %3709 = vmatprep.subr.bf16.mxu0 %v3708_v55  ;;  %3717 = vmatprep.subr.bf16.mxu1 %v3716_v56  ;;  %v2988_v20 = vmax.f32 %v2696_v60, 0.0  ;;  %v2990_v21 = vmax.f32 %v2785_v61, 0.0 }
 0x3d0   : > { %v2700_v28 = vadd.f32 %v2699_v62, %v4662_v57  ;;  %v2789_v9 = vadd.f32 %v2788_v63, %v4662_v57  ;;  %v2701_v10 = vpop.f32.mrb[87].mxu0  ;;  %v2790_v12 = vpop.f32.mrb[87].mxu1  ;;  %3711 = vmatpush1.bf16.msra.mxu0 %v3710_v11  ;;  %3719 = vmatpush1.bf16.msra.mxu1 %v3718_v33 }
 0x3d1   : > { %v2702_v14 = vadd.f32 %v2701_v10, %v4662_v57  ;;  %v2791_v15 = vadd.f32 %v2790_v12, %v4662_v57 }
 0x3d2   : > { %v2995_v18 = vmax.f32 %v2700_v28, 0.0  ;;  %v2997_v19 = vmax.f32 %v2789_v9, 0.0 }
 0x3d3   : > { %v2996_v22 = vmax.f32 %v2702_v14, 0.0  ;;  %v2998_v23 = vmax.f32 %v2791_v15, 0.0 }
 0x3d4   : > { %v3714_v24 = vpack.c.bf16 %v2995_v18, %v2987_v16  ;;  %v3722_v51 = vpack.c.bf16 %v2997_v19, %v2989_v17 }
 0x3d5   : > { %v3712_v26 = vpack.c.bf16 %v2996_v22, %v2988_v20  ;;  %v3720_v29 = vpack.c.bf16 %v2998_v23, %v2990_v21 }
 0x3d7   : > { %3713 = vmatprep.subr.bf16.mxu0 %v3712_v26  ;;  %3721 = vmatprep.subr.bf16.mxu1 %v3720_v29 }
 0x3d8   : > { %3715 = vmatpush1.bf16.msra.mxu0 %v3714_v24  ;;  %3723 = vmatpush1.bf16.msra.mxu1 %v3722_v51 }
 0x3db   : > { %3539 = vmatmul.mubr.msk.f32.vlgmr.msra.gmra.mrb[96].mxu0 %vm2034_vm3, %v4675_v30  ;;  %3540 = vmatmul.mubr.msk.f32.vlgmr.msra.gmra.mrb[96].mxu1 %vm2034_vm3, %v4675_v30 }
 0x3dc   : > { %3219 = vmatprep.mubr.f32.mxu0 %v3828_v4  ;;  %3290 = vmatprep.mubr.f32.mxu1 %v3828_v4 }
 0x3e4   : > { %v2859_v31 = vpop.f32.mrb[88].mxu0  ;;  %v2948_v32 = vpop.f32.mrb[88].mxu1 }
 0x3e5   : > { %v2861_v13 = vpop.f32.mrb[89].mxu0  ;;  %v2950_v25 = vpop.f32.mrb[89].mxu1  ;;  %v2860_v34 = vadd.f32 %v2859_v31, %v4648_v36  ;;  %v2949_v35 = vadd.f32 %v2948_v32, %v4648_v36 }
 0x3e6   : > { %v2862_v38 = vadd.f32 %v2861_v13, %v4648_v36  ;;  %v2951_v39 = vadd.f32 %v2950_v25, %v4648_v36 }
 0x3e7   : > { %v2975_v46 = vmax.f32 %v2860_v34, 0.0  ;;  %v2977_v47 = vmax.f32 %v2949_v35, 0.0 }
 0x3e8   : > { %v2865_v40 = vpop.f32.mrb[90].mxu0  ;;  %v2954_v54 = vpop.f32.mrb[90].mxu1  ;;  %v2976_v1 = vmax.f32 %v2862_v38, 0.0  ;;  %v2978_v2 = vmax.f32 %v2951_v39, 0.0 }
 0x3e9   : > { %v2866_v41 = vadd.f32 %v2865_v40, %v4650_v37  ;;  %v2955_v42 = vadd.f32 %v2954_v54, %v4650_v37  ;;  %v2867_v43 = vpop.f32.mrb[91].mxu0  ;;  %v2956_v4 = vpop.f32.mrb[91].mxu1 }
 0x3ea   : > { %v2868_v44 = vadd.f32 %v2867_v43, %v4650_v37  ;;  %v2957_v45 = vadd.f32 %v2956_v4, %v4650_v37 }
 0x3eb   : > { %v2983_v48 = vmax.f32 %v2866_v41, 0.0  ;;  %v2985_v0 = vmax.f32 %v2955_v42, 0.0 }
 0x3ec   : > { %v2984_v27 = vmax.f32 %v2868_v44, 0.0  ;;  %v2986_v36 = vmax.f32 %v2957_v45, 0.0  ;;  %v2871_v3 = vpop.f32.mrb[92].mxu0  ;;  %v2960_v5 = vpop.f32.mrb[92].mxu1 }
 0x3ed   : > { %v3726_v49 = vpack.c.bf16 %v2983_v48, %v2975_v46  ;;  %v3734_v6 = vpack.c.bf16 %v2985_v0, %v2977_v47  ;;  %v2873_v7 = vpop.f32.mrb[93].mxu0  ;;  %v2962_v8 = vpop.f32.mrb[93].mxu1  ;;  %v2872_v50 = vadd.f32 %v2871_v3, %v4660_v53  ;;  %v2961_v37 = vadd.f32 %v2960_v5, %v4660_v53 }
 0x3ee   : > { %v3724_v11 = vpack.c.bf16 %v2984_v27, %v2976_v1  ;;  %v3732_v33 = vpack.c.bf16 %v2986_v36, %v2978_v2  ;;  %v2874_v52 = vadd.f32 %v2873_v7, %v4660_v53  ;;  %v2963_v55 = vadd.f32 %v2962_v8, %v4660_v53 }
 0x3ef   : > { %v2991_v9 = vmax.f32 %v2872_v50, 0.0  ;;  %v2993_v10 = vmax.f32 %v2961_v37, 0.0 }
 0x3f0   : > { %v2877_v56 = vpop.f32.mrb[94].mxu0  ;;  %v2966_v58 = vpop.f32.mrb[94].mxu1  ;;  %3725 = vmatprep.subr.bf16.mxu0 %v3724_v11  ;;  %3733 = vmatprep.subr.bf16.mxu1 %v3732_v33  ;;  %v2992_v14 = vmax.f32 %v2874_v52, 0.0  ;;  %v2994_v15 = vmax.f32 %v2963_v55, 0.0 }
 0x3f1   : > { %v2878_v59 = vadd.f32 %v2877_v56, %v4662_v57  ;;  %v2967_v60 = vadd.f32 %v2966_v58, %v4662_v57  ;;  %v2879_v61 = vpop.f32.mrb[95].mxu0  ;;  %v2968_v62 = vpop.f32.mrb[95].mxu1  ;;  %3727 = vmatpush1.bf16.msra.mxu0 %v3726_v49  ;;  %3735 = vmatpush1.bf16.msra.mxu1 %v3734_v6 }
 0x3f2   : > { %v2880_v63 = vadd.f32 %v2879_v61, %v4662_v57  ;;  %v2969_v28 = vadd.f32 %v2968_v62, %v4662_v57  ;;  %v3008_v57 = vpop.permute.xlu0 %3007 }
 0x3f3   : > { %v2999_v12 = vmax.f32 %v2878_v59, 0.0  ;;  %v3001_v53 = vmax.f32 %v2967_v60, 0.0 }
 0x3f4   : > { %v3000_v16 = vmax.f32 %v2880_v63, 0.0  ;;  %v3002_v17 = vmax.f32 %v2969_v28, 0.0 }
 0x3f5   : > { %v3730_v18 = vpack.c.bf16 %v2999_v12, %v2991_v9  ;;  %v3738_v19 = vpack.c.bf16 %v3001_v53, %v2993_v10 }
 0x3f6   : > { %v3728_v20 = vpack.c.bf16 %v3000_v16, %v2992_v14  ;;  %v3736_v21 = vpack.c.bf16 %v3002_v17, %v2994_v15 }
 0x3f8   : > { %3729 = vmatprep.subr.bf16.mxu0 %v3728_v20  ;;  %3737 = vmatprep.subr.bf16.mxu1 %v3736_v21 }
 0x3f9   : > { %3731 = vmatpush1.bf16.msra.mxu0 %v3730_v18  ;;  %3739 = vmatpush1.bf16.msra.mxu1 %v3738_v19 }
 0x3fc   : > { %3541 = vmatmul.mubr.msk.f32.vlgmr.msra.gmra.mrb[98].mxu0 %vm2034_vm3, %v4675_v30  ;;  %3542 = vmatmul.mubr.msk.f32.vlgmr.msra.gmra.mrb[98].mxu1 %vm2034_vm3, %v4675_v30 }
 0x4ae   : > { %v3079_v22 = vpop.f32.mrb[96].mxu0  ;;  %v3150_v23 = vpop.f32.mrb[96].mxu1 }
 0x4af   : > { %v3080_v24 = vadd.f32 %v3079_v22, %v3008_v57  ;;  %v3151_v51 = vadd.f32 %v3150_v23, %v3008_v57  ;;  %v3081_v26 = vpop.f32.mrb[97].mxu0  ;;  %v3152_v29 = vpop.f32.mrb[97].mxu1 }
 0x4b0   : > { %v3082_v31 = vadd.f32 %v3081_v26, %v3008_v57  ;;  %v3153_v32 = vadd.f32 %v3152_v29, %v3008_v57 }
 0x4b2   : > { %v3305_v13 = vcombine.low %v3080_v24, %v3082_v31  ;;  %v3306_v25 = vcombine.low %v3151_v51, %v3153_v32 }
 0x4b4   : > { %3313 = vst [vmem:[%s406_s22] sm:$0x77] %v3305_v13  ;;  %3314 = vst [vmem:[%s406_s22 + $0x8] sm:$0x77] %v3306_v25 }
 0x4cf   : > { %v3221_v34 = vpop.f32.mrb[98].mxu0  ;;  %v3292_v30 = vpop.f32.mrb[98].mxu1 }
 0x4d0   : > { %v3222_v35 = vadd.f32 %v3221_v34, %v3008_v57  ;;  %v3293_v38 = vadd.f32 %v3292_v30, %v3008_v57  ;;  %v3223_v39 = vpop.f32.mrb[99].mxu0  ;;  %v3294_v40 = vpop.f32.mrb[99].mxu1 }
 0x4d1   : > { %v3224_v54 = vadd.f32 %v3223_v39, %v3008_v57  ;;  %v3295_v41 = vadd.f32 %v3294_v40, %v3008_v57 }
 0x4d3   : > { %v3307_v42 = vcombine.low %v3222_v35, %v3224_v54  ;;  %v3308_v43 = vcombine.low %v3293_v38, %v3295_v41 }
 0x4d5   : > { %3315 = vst [vmem:[%s406_s22 + $0x10] sm:$0x77] %v3307_v42  ;;  %3316 = vst [vmem:[%s406_s22 + $0x18] sm:$0x77] %v3308_v43 }
 0x4d6 PF: > { %s21_s17 = sadd.s32 1, %s3826_s17  }
 0x4d7   : > { %p18_p4 = scmp.ge.s32.totalorder %s21_s17, 4  }
 0x4d9   :  { %20 = sbr.rel (!%p18_p4) target bundleno = 1 (0x1), region = 97 }

</bundles_post_ra>
